<compile_context>
chip_gen: v5e
topology: v5e:2x2
jax: 0.10.0
libtpu: 0.0.40
codegen_flags: <defaults>
</compile_context>

<pallas_src>
import functools

import jax
import jax.numpy as jnp
from jax import lax
from jax.experimental import pallas as pl
from jax.experimental.pallas import tpu as pltpu

DIM = 2             # problem dimensionality (self.dim)
NSTATE = DIM + 1    # state rows: [elastic_strain(2), density(1)]
HID = 32            # hidden width of both MLPs (h_dim = [32, 32]), tanh activation
NIN = 8             # fused input rows: [state(3); strain_rate(2); pad(3)] -> full sublane tile

TB_ALIGN = 512      # batch tiles are multiples of 512 lanes
MAX_TB = 4096       # max batch tile (f32 live intermediates ~5-8 MiB -> fits every generation)

# ---------------- parameter slab layout: one (SLAB_ROWS, 128) f32 array ----------------
EW1_R = 0                  # energy net    W1 (HID, 3)
EW2_R = EW1_R + HID        # energy net    W2 (HID, HID)
FW1_R = EW2_R + HID        # evolution net W1[:, :2] (HID, 2)  (stress input columns)
FW2_R = FW1_R + HID        # evolution net W2 (HID, HID)
FW3_R = FW2_R + HID        # evolution net W3 (2, HID)
VEC_R = FW3_R + 8          # column-vector block (HID rows tall)
SLAB_ROWS = VEC_R + HID    # = 168

# columns of the vector block (each parameter is a *column* so it broadcasts over lanes)
C_ST_SHIFT = 0    # (3,)  [strain shift(2); density shift]
C_ST_ISCALE = 1   # (3,)  1 / [strain scale(2); density scale]
C_SG_SHIFT = 2    # (2,)  stress shift
C_SG_ISCALE = 3   # (2,)  1 / stress scale
C_SR_SCALE = 4    # (2,)  strain-rate scale  (DeNormalize)
C_SR_SHIFT = 5    # (2,)  strain-rate shift
C_EW3G = 6        # (HID,) prm_energy_scale * eW3  (pre-scaled backprop seed column)
C_EB1 = 7
C_EB2 = 8
C_FB1 = 9
C_FB2 = 10
C_FB3 = 11        # (2,)
C_FW1RHO = 12     # (HID,) evolution W1[:, 2] (density input column)


def _round_up(x, m):
    return ((x + m - 1) // m) * m


def _default_act_dtype():
    """bf16 activations on bf16-native VPU/EUP generations (v6e, v7x); f32 otherwise."""
    try:
        kind = jax.devices()[0].device_kind.lower()
    except Exception:
        return jnp.float32
    if any(tag in kind for tag in ("v6", "v7", "7x")):
        return jnp.bfloat16
    return jnp.float32


def nice_kernel(x_ref, slab_ref, out_ref, *, act_dtype):
    st = x_ref[0:NSTATE, :]                    # (3, TB): rows [es0, es1, rho]
    sr = x_ref[NSTATE:NSTATE + DIM, :]         # (2, TB): strain rate

    v = VEC_R
    st_shift = slab_ref[v:v + NSTATE, C_ST_SHIFT:C_ST_SHIFT + 1]      # (3,1)
    st_iscale = slab_ref[v:v + NSTATE, C_ST_ISCALE:C_ST_ISCALE + 1]   # (3,1)
    sg_shift = slab_ref[v:v + DIM, C_SG_SHIFT:C_SG_SHIFT + 1]         # (2,1)
    sg_iscale = slab_ref[v:v + DIM, C_SG_ISCALE:C_SG_ISCALE + 1]      # (2,1)
    sr_scale = slab_ref[v:v + DIM, C_SR_SCALE:C_SR_SCALE + 1]         # (2,1)
    sr_shift = slab_ref[v:v + DIM, C_SR_SHIFT:C_SR_SHIFT + 1]         # (2,1)
    ew3g = slab_ref[v:v + HID, C_EW3G:C_EW3G + 1]                     # (HID,1)
    eb1 = slab_ref[v:v + HID, C_EB1:C_EB1 + 1]                        # (HID,1)
    eb2 = slab_ref[v:v + HID, C_EB2:C_EB2 + 1]
    fb1 = slab_ref[v:v + HID, C_FB1:C_FB1 + 1]
    fb2 = slab_ref[v:v + HID, C_FB2:C_FB2 + 1]
    fb3 = slab_ref[v:v + DIM, C_FB3:C_FB3 + 1]                        # (2,1)
    fw1rho = slab_ref[v:v + HID, C_FW1RHO:C_FW1RHO + 1]               # (HID,1)

    ew1 = slab_ref[EW1_R:EW1_R + HID, 0:NSTATE]    # (HID, 3)  f32
    ew2 = slab_ref[EW2_R:EW2_R + HID, 0:HID]       # (HID, HID) f32
    fw1s = slab_ref[FW1_R:FW1_R + HID, 0:DIM]      # (HID, 2)  f32
    fw2 = slab_ref[FW2_R:FW2_R + HID, 0:HID]       # (HID, HID) f32
    fw3 = slab_ref[FW3_R:FW3_R + DIM, 0:HID]       # (2, HID)  f32

    # Normalize the whole state at once:  rows = [norm_es(2); norm_rho(1)]  (f32)
    ns = (st - st_shift) * st_iscale               # (3, TB)
    rho = st[DIM:DIM + 1, :]                       # (1, TB)
    nrho = ns[DIM:DIM + 1, :]                      # (1, TB)

    # ---- energy net psi forward (value unused; only its gradient). act_dtype activations,
    #      f32 MXU accumulation.
    z1 = jnp.dot(ew1.astype(act_dtype), ns.astype(act_dtype),
                 preferred_element_type=jnp.float32) + eb1             # (HID, TB) f32
    a1 = jnp.tanh(z1.astype(act_dtype))                                # (HID, TB) act
    z2 = jnp.dot(ew2.astype(act_dtype), a1,
                 preferred_element_type=jnp.float32) + eb2
    a2 = jnp.tanh(z2.astype(act_dtype))                                # (HID, TB) act

    # ---- analytic backprop: d(energy)/d(state) — replaces torch.autograd.grad.
    #      Gradient chain stays in f32 (gates, W^T@g, chain rule through Normalize).
    a1f = a1.astype(jnp.float32)
    a2f = a2.astype(jnp.float32)
    tn = (((0,), (0,)), ((), ()))                  # contract dim0 <-> dim0  ==  W^T @ g
    g2 = ew3g * (1.0 - a2f * a2f)                                              # (HID, TB)
    g1 = lax.dot_general(ew2, g2, tn, preferred_element_type=jnp.float32) * (1.0 - a1f * a1f)
    gx = lax.dot_general(ew1, g1, tn, preferred_element_type=jnp.float32)      # (3, TB)
    gs = gx * st_iscale                            # chain through Normalize: dE/d[es; rho]

    stress_e = rho * gs[0:DIM, :]                  # (2, TB) f32
    chem_rho = rho * rho * gs[DIM:DIM + 1, :]      # chemical_potential * rho      (1, TB)

    # ---- evolution net f on [Normalize(stress_e), norm_rho] (rank-1 density term, no concat)
    nstress = (stress_e - sg_shift) * sg_iscale    # (2, TB) f32
    zh1 = jnp.dot(fw1s.astype(act_dtype), nstress.astype(act_dtype),
                  preferred_element_type=jnp.float32) + fw1rho * nrho + fb1     # (HID, TB) f32
    h1 = jnp.tanh(zh1.astype(act_dtype))
    zh2 = jnp.dot(fw2.astype(act_dtype), h1, preferred_element_type=jnp.float32) + fb2
    h2 = jnp.tanh(zh2.astype(act_dtype))
    ode = jnp.dot(fw3.astype(act_dtype), h2, preferred_element_type=jnp.float32) + fb3  # (2, TB)

    esr = ode * sr_scale + sr_shift                # DeNormalize -> elastic strain rate (f32)
    psr = sr - esr                                 # plastic strain rate
    density_rate = rho * sr[0:1, :]                # (1, TB)
    # total stress = stress_e + [chem_pot*rho, 0]; dissipation = sum(stress * psr)  (f32)
    diss = jnp.sum(stress_e * psr, axis=0, keepdims=True) + chem_rho * psr[0:1, :]

    out_ref[0:DIM, :] = esr
    out_ref[DIM:DIM + 1, :] = density_rate
    out_ref[DIM + 1:DIM + 2, :] = diss


def _nice_pallas_call(x, slab, act_dtype):
    """x: (NIN, bp) feature-major, bp a multiple of 512 (and of MAX_TB if bp > MAX_TB)."""
    nfeat, bp = x.shape
    assert nfeat == NIN
    tb = min(MAX_TB, bp)
    assert bp % tb == 0 and tb % TB_ALIGN == 0
    kernel = functools.partial(nice_kernel, act_dtype=act_dtype)
    return pl.pallas_call(
        kernel,
        out_shape=jax.ShapeDtypeStruct((DIM + 2, bp), jnp.float32),
        grid_spec=pltpu.PrefetchScalarGridSpec(
            num_scalar_prefetch=0,
            grid=(bp // tb,),          # on v7x both TCs split this "parallel" axis
            in_specs=[
                pl.BlockSpec((NIN, tb), lambda i: (0, i)),           # fused state+strain-rate
                pl.BlockSpec((SLAB_ROWS, 128), lambda i: (0, 0)),    # constant slab: one DMA
            ],
            out_specs=pl.BlockSpec((DIM + 2, tb), lambda i: (0, i)),
        ),
        compiler_params=pltpu.CompilerParams(
            dimension_semantics=("parallel",),
            vmem_limit_bytes=32 * 1024 * 1024,
        ),
    )(x, slab)


@functools.partial(jax.jit, static_argnames=("act_dtype",))
def nice_rhs_packed(x_packed, slab, act_dtype=jnp.float32):
    """Hot path for ODE integration: feature-major (8, bp) in -> (4, bp) out, no transposes."""
    return _nice_pallas_call(x_packed, slab, act_dtype)


def _pack_inputs(state, strain_rate):
    """(B,3)+(B,2) batch-major -> (8, bp) feature-major, zero-padded to a tile multiple."""
    b = state.shape[0]
    tb = min(MAX_TB, _round_up(b, TB_ALIGN))
    bp = _round_up(b, tb)
    x = jnp.concatenate([state, strain_rate], axis=-1).astype(jnp.float32)   # (B, 5)
    x = jnp.pad(x, ((0, bp - b), (0, NIN - (NSTATE + DIM))))                 # (bp, 8)
    return x.T                                                               # (8, bp)


@functools.partial(jax.jit, static_argnames=("act_dtype",))
def nice_forward(state, strain_rate, slab, act_dtype=jnp.float32):
    """Convenience batch-major wrapper: state (B,3), strain_rate (B,2) -> (B,4).
    The transpose/pad here is one-off boundary plumbing; repeated RHS evaluations should
    keep the state feature-major and call nice_rhs_packed directly."""
    b = state.shape[0]
    out = _nice_pallas_call(_pack_inputs(state, strain_rate), slab, act_dtype)
    return out[:, :b].T


# ------------------------------ parameters & reference ------------------------------
def _init_linear(key, fan_in, fan_out):
    """torch.nn.Linear default init; weight stored (out, in)."""
    kw, kb = jax.random.split(key)
    bound = float(fan_in) ** -0.5
    w = jax.random.uniform(kw, (fan_out, fan_in), jnp.float32, -bound, bound)
    b = jax.random.uniform(kb, (fan_out,), jnp.float32, -bound, bound)
    return w, b


def make_params(key):
    keys = jax.random.split(key, 6)
    eW1, eb1 = _init_linear(keys[0], NSTATE, HID)   # energy psi: 3 -> 32 -> 32 -> 1
    eW2, eb2 = _init_linear(keys[1], HID, HID)
    eW3, eb3 = _init_linear(keys[2], HID, 1)
    fW1, fb1 = _init_linear(keys[3], NSTATE, HID)   # evolution f: 3 -> 32 -> 32 -> 2
    fW2, fb2 = _init_linear(keys[4], HID, HID)
    fW3, fb3 = _init_linear(keys[5], HID, DIM)

    # normalization params: rows = [scale; shift]   (frac = 1 -> prm_strain_elastic == prm_strain)
    prm_strain = jnp.array([[0.05, 0.02], [0.0, 0.0]], jnp.float32)
    prm_density = jnp.array([[0.3], [1.6]], jnp.float32)
    prm_stress = jnp.array([[200.0, 150.0], [0.0, 0.0]], jnp.float32)
    prm_strain_rate = jnp.array([[0.01, 0.01], [0.0, 0.0]], jnp.float32)
    prm_energy = (jnp.linalg.norm(prm_stress, axis=1)
                  * jnp.linalg.norm(prm_strain, axis=1)) / prm_density[0, 0]       # (2,)
    pe_scale = prm_energy[0]

    slab = jnp.zeros((SLAB_ROWS, 128), jnp.float32)
    slab = slab.at[EW1_R:EW1_R + HID, 0:NSTATE].set(eW1)
    slab = slab.at[EW2_R:EW2_R + HID, 0:HID].set(eW2)
    slab = slab.at[FW1_R:FW1_R + HID, 0:DIM].set(fW1[:, 0:DIM])
    slab = slab.at[FW2_R:FW2_R + HID, 0:HID].set(fW2)
    slab = slab.at[FW3_R:FW3_R + DIM, 0:HID].set(fW3)
    v = VEC_R
    slab = slab.at[v:v + NSTATE, C_ST_SHIFT].set(jnp.concatenate([prm_strain[1], prm_density[1]]))
    slab = slab.at[v:v + NSTATE, C_ST_ISCALE].set(1.0 / jnp.concatenate([prm_strain[0], prm_density[0]]))
    slab = slab.at[v:v + DIM, C_SG_SHIFT].set(prm_stress[1])
    slab = slab.at[v:v + DIM, C_SG_ISCALE].set(1.0 / prm_stress[0])
    slab = slab.at[v:v + DIM, C_SR_SCALE].set(prm_strain_rate[0])
    slab = slab.at[v:v + DIM, C_SR_SHIFT].set(prm_strain_rate[1])
    slab = slab.at[v:v + HID, C_EW3G].set(pe_scale * eW3[0, :])
    slab = slab.at[v:v + HID, C_EB1].set(eb1)
    slab = slab.at[v:v + HID, C_EB2].set(eb2)
    slab = slab.at[v:v + HID, C_FB1].set(fb1)
    slab = slab.at[v:v + HID, C_FB2].set(fb2)
    slab = slab.at[v:v + DIM, C_FB3].set(fb3)
    slab = slab.at[v:v + HID, C_FW1RHO].set(fW1[:, DIM])

    raw = (eW1, eb1, eW2, eb2, eW3, eb3, fW1, fb1, fW2, fb2, fW3, fb3,
           prm_strain, prm_density, prm_stress, prm_strain_rate, prm_energy)
    return slab, raw


def nice_reference(state, strain_rate, raw):
    """Pure-JAX reference mirroring NICE.forward (batch-major, autodiff for the stress)."""
    (eW1, eb1, eW2, eb2, eW3, eb3, fW1, fb1, fW2, fb2, fW3, fb3,
     prm_strain, prm_density, prm_stress, prm_strain_rate, prm_energy) = raw
    prec = lax.Precision.HIGHEST

    def norm(x, prm):
        return (x - prm[1]) / prm[0]

    def denorm(x, prm):
        return x * prm[0] + prm[1]

    es = state[:, :DIM]
    rho = state[:, DIM:DIM + 1]

    def energy_fn(es_, rho_):
        x = jnp.concatenate([norm(es_, prm_strain), norm(rho_, prm_density)], -1)
        a1 = jnp.tanh(jnp.dot(x, eW1.T, precision=prec) + eb1)
        a2 = jnp.tanh(jnp.dot(a1, eW2.T, precision=prec) + eb2)
        ne = jnp.dot(a2, eW3.T, precision=prec) + eb3
        return jnp.sum(denorm(ne, prm_energy))

    dE_des, dE_drho = jax.grad(energy_fn, argnums=(0, 1))(es, rho)
    stress_e = rho * dE_des
    chem = rho * dE_drho
    stress = stress_e + jnp.concatenate([chem * rho, jnp.zeros_like(chem)], -1)

    y = jnp.concatenate([norm(stress_e, prm_stress), norm(rho, prm_density)], -1)
    h1 = jnp.tanh(jnp.dot(y, fW1.T, precision=prec) + fb1)
    h2 = jnp.tanh(jnp.dot(h1, fW2.T, precision=prec) + fb2)
    ode = jnp.dot(h2, fW3.T, precision=prec) + fb3

    esr = denorm(ode[:, :DIM], prm_strain_rate)
    psr = strain_rate - esr
    density_rate = rho * strain_rate[:, :1]
    diss = jnp.sum(stress * psr, axis=-1, keepdims=True)
    return jnp.concatenate([esr, density_rate, diss], -1)


if __name__ == "__main__":
    key = jax.random.PRNGKey(0)
    k_es, k_rho, k_params = jax.random.split(key, 3)

    B = 512
    es0 = 0.01 * jax.random.normal(k_es, (B, DIM), jnp.float32)
    rho0 = 1.6 + 0.1 * jax.random.normal(k_rho, (B, 1), jnp.float32)
    state = jnp.concatenate([es0, rho0], axis=-1)                      # (B, 3)

    # TODO(synk): strain_rate comes from SciPy RectBivariateSpline derivatives of
    # experimental protocols (interp_dotev/interp_dotes) — no Pallas equivalent; a
    # deterministic synthetic strain rate at time t is used instead.
    t = jnp.float32(0.5)
    idx = jnp.arange(B, dtype=jnp.float32)
    strain_rate = jnp.stack([0.01 * jnp.sin(t + 0.1 * idx),
                             0.005 * jnp.cos(t + 0.1 * idx)], axis=-1)  # (B, 2)

    slab, raw = make_params(k_params)
    ref = nice_reference(state, strain_rate, raw)

    # 1) correctness gate: all-f32 kernel vs pure-JAX autodiff reference
    out_f32 = jax.block_until_ready(nice_forward(state, strain_rate, slab,
                                                 act_dtype=jnp.float32))
    assert out_f32.shape == (B, DIM + 2)
    assert bool(jnp.all(jnp.isfinite(out_f32)))
    assert bool(jnp.allclose(out_f32, ref, rtol=2e-2, atol=5e-2)), \
        f"f32 max abs diff {float(jnp.max(jnp.abs(out_f32 - ref)))}"

    # 2) device-tuned path: bf16 activations on v6e/v7x (f32 gradient/stress math), f32 on v5e
    act = _default_act_dtype()
    out = jax.block_until_ready(nice_forward(state, strain_rate, slab, act_dtype=act))
    assert bool(jnp.all(jnp.isfinite(out)))
    assert bool(jnp.allclose(out, ref, rtol=3e-2, atol=8e-2)), \
        f"{jnp.dtype(act).name} max abs diff {float(jnp.max(jnp.abs(out - ref)))}"

    # 3) exercise the packed hot-path API (no per-call transpose; what an ODE loop would use)
    x_packed = jax.block_until_ready(jax.jit(_pack_inputs)(state, strain_rate))
    out_packed = jax.block_until_ready(nice_rhs_packed(x_packed, slab, act_dtype=act))
    assert bool(jnp.allclose(out_packed[:, :B].T, out))

    print("KERNEL_OK")
</pallas_src>

<mosaic_0001>
module attributes {stable_mosaic.version = 11 : i64} {
  func.func @nice_kernel(%arg0: i32, %arg1: memref<8x512xf32, #tpu.memory_space<vmem>>, %arg2: memref<168x128xf32, #tpu.memory_space<vmem>>, %arg3: memref<4x512xf32, #tpu.memory_space<vmem>>) attributes {dimension_semantics = [#tpu.dimension_semantics<parallel>], iteration_bounds = array<i64: 1>, scalar_prefetch = 0 : i64, scratch_operands = 0 : i64, tpu.core_type = #tpu.core_type<tc>, window_params = [{transform_indices = @transform_0, window_bounds = array<i64: 8, 512>}, {pipeline_mode = #tpu.pipeline_mode<synchronous>, transform_indices = @transform_1, window_bounds = array<i64: 168, 128>}, {transform_indices = @transform_2, window_bounds = array<i64: 4, 512>}]} {
    %c0 = arith.constant 0 : index
    %c0_0 = arith.constant 0 : index
    %0 = vector.load %arg1[%c0, %c0_0] : memref<8x512xf32, #tpu.memory_space<vmem>>, vector<3x512xf32>
    %c3 = arith.constant 3 : index
    %c0_1 = arith.constant 0 : index
    %1 = vector.load %arg1[%c3, %c0_1] : memref<8x512xf32, #tpu.memory_space<vmem>>, vector<2x512xf32>
    %c136 = arith.constant 136 : index
    %c0_2 = arith.constant 0 : index
    %2 = vector.load %arg2[%c136, %c0_2] : memref<168x128xf32, #tpu.memory_space<vmem>>, vector<3x1xf32>
    %c136_3 = arith.constant 136 : index
    %c1 = arith.constant 1 : index
    %3 = vector.load %arg2[%c136_3, %c1] : memref<168x128xf32, #tpu.memory_space<vmem>>, vector<3x1xf32>
    %c136_4 = arith.constant 136 : index
    %c2 = arith.constant 2 : index
    %4 = vector.load %arg2[%c136_4, %c2] : memref<168x128xf32, #tpu.memory_space<vmem>>, vector<2x1xf32>
    %c136_5 = arith.constant 136 : index
    %c3_6 = arith.constant 3 : index
    %5 = vector.load %arg2[%c136_5, %c3_6] : memref<168x128xf32, #tpu.memory_space<vmem>>, vector<2x1xf32>
    %c136_7 = arith.constant 136 : index
    %c4 = arith.constant 4 : index
    %6 = vector.load %arg2[%c136_7, %c4] : memref<168x128xf32, #tpu.memory_space<vmem>>, vector<2x1xf32>
    %c136_8 = arith.constant 136 : index
    %c5 = arith.constant 5 : index
    %7 = vector.load %arg2[%c136_8, %c5] : memref<168x128xf32, #tpu.memory_space<vmem>>, vector<2x1xf32>
    %c136_9 = arith.constant 136 : index
    %c6 = arith.constant 6 : index
    %8 = vector.load %arg2[%c136_9, %c6] : memref<168x128xf32, #tpu.memory_space<vmem>>, vector<32x1xf32>
    %c136_10 = arith.constant 136 : index
    %c7 = arith.constant 7 : index
    %9 = vector.load %arg2[%c136_10, %c7] : memref<168x128xf32, #tpu.memory_space<vmem>>, vector<32x1xf32>
    %c136_11 = arith.constant 136 : index
    %c8 = arith.constant 8 : index
    %10 = vector.load %arg2[%c136_11, %c8] : memref<168x128xf32, #tpu.memory_space<vmem>>, vector<32x1xf32>
    %c136_12 = arith.constant 136 : index
    %c9 = arith.constant 9 : index
    %11 = vector.load %arg2[%c136_12, %c9] : memref<168x128xf32, #tpu.memory_space<vmem>>, vector<32x1xf32>
    %c136_13 = arith.constant 136 : index
    %c10 = arith.constant 10 : index
    %12 = vector.load %arg2[%c136_13, %c10] : memref<168x128xf32, #tpu.memory_space<vmem>>, vector<32x1xf32>
    %c136_14 = arith.constant 136 : index
    %c11 = arith.constant 11 : index
    %13 = vector.load %arg2[%c136_14, %c11] : memref<168x128xf32, #tpu.memory_space<vmem>>, vector<2x1xf32>
    %c136_15 = arith.constant 136 : index
    %c12 = arith.constant 12 : index
    %14 = vector.load %arg2[%c136_15, %c12] : memref<168x128xf32, #tpu.memory_space<vmem>>, vector<32x1xf32>
    %c0_16 = arith.constant 0 : index
    %c0_17 = arith.constant 0 : index
    %15 = vector.load %arg2[%c0_16, %c0_17] : memref<168x128xf32, #tpu.memory_space<vmem>>, vector<32x3xf32>
    %c32 = arith.constant 32 : index
    %c0_18 = arith.constant 0 : index
    %16 = vector.load %arg2[%c32, %c0_18] : memref<168x128xf32, #tpu.memory_space<vmem>>, vector<32x32xf32>
    %c64 = arith.constant 64 : index
    %c0_19 = arith.constant 0 : index
    %17 = vector.load %arg2[%c64, %c0_19] : memref<168x128xf32, #tpu.memory_space<vmem>>, vector<32x2xf32>
    %c96 = arith.constant 96 : index
    %c0_20 = arith.constant 0 : index
    %18 = vector.load %arg2[%c96, %c0_20] : memref<168x128xf32, #tpu.memory_space<vmem>>, vector<32x32xf32>
    %c128 = arith.constant 128 : index
    %c0_21 = arith.constant 0 : index
    %19 = vector.load %arg2[%c128, %c0_21] : memref<168x128xf32, #tpu.memory_space<vmem>>, vector<2x32xf32>
    %20 = vector.broadcast %2 : vector<3x1xf32> to vector<3x512xf32>
    %21 = arith.subf %0, %20 : vector<3x512xf32>
    %22 = vector.broadcast %3 : vector<3x1xf32> to vector<3x512xf32>
    %23 = arith.mulf %21, %22 : vector<3x512xf32>
    %24 = vector.extract_strided_slice %0 {offsets = [2, 0], sizes = [1, 512], strides = [1, 1]} : vector<3x512xf32> to vector<1x512xf32>
    %25 = vector.extract_strided_slice %23 {offsets = [2, 0], sizes = [1, 512], strides = [1, 1]} : vector<3x512xf32> to vector<1x512xf32>
    %cst = arith.constant dense<0.000000e+00> : vector<32x512xf32>
    %26 = tpu.matmul %15, %23, %cst {dimension_numbers = #tpu.dot_dimension_numbers<[1], [0], [0], [1], [0, 0, 1, 1], [], []>} : vector<32x3xf32>, vector<3x512xf32>, vector<32x512xf32> -> vector<32x512xf32>
    %27 = vector.broadcast %9 : vector<32x1xf32> to vector<32x512xf32>
    %28 = arith.addf %26, %27 : vector<32x512xf32>
    %29 = math.tanh %28 : vector<32x512xf32>
    %cst_22 = arith.constant dense<0.000000e+00> : vector<32x512xf32>
    %30 = tpu.matmul %16, %29, %cst_22 {dimension_numbers = #tpu.dot_dimension_numbers<[1], [0], [0], [1], [0, 0, 1, 1], [], []>} : vector<32x32xf32>, vector<32x512xf32>, vector<32x512xf32> -> vector<32x512xf32>
    %31 = vector.broadcast %10 : vector<32x1xf32> to vector<32x512xf32>
    %32 = arith.addf %30, %31 : vector<32x512xf32>
    %33 = math.tanh %32 : vector<32x512xf32>
    %34 = arith.mulf %33, %33 : vector<32x512xf32>
    %cst_23 = arith.constant 1.000000e+00 : f32
    %35 = vector.broadcast %cst_23 : f32 to vector<32x512xf32>
    %36 = arith.subf %35, %34 : vector<32x512xf32>
    %37 = vector.broadcast %8 : vector<32x1xf32> to vector<32x512xf32>
    %38 = arith.mulf %37, %36 : vector<32x512xf32>
    %cst_24 = arith.constant dense<0.000000e+00> : vector<32x512xf32>
    %39 = tpu.matmul %16, %38, %cst_24 {dimension_numbers = #tpu.dot_dimension_numbers<[0], [0], [1], [1], [0, 1, 1, 1], [], []>} : vector<32x32xf32>, vector<32x512xf32>, vector<32x512xf32> -> vector<32x512xf32>
    %40 = arith.mulf %29, %29 : vector<32x512xf32>
    %cst_25 = arith.constant 1.000000e+00 : f32
    %41 = vector.broadcast %cst_25 : f32 to vector<32x512xf32>
    %42 = arith.subf %41, %40 : vector<32x512xf32>
    %43 = arith.mulf %39, %42 : vector<32x512xf32>
    %cst_26 = arith.constant dense<0.000000e+00> : vector<3x512xf32>
    %44 = tpu.matmul %15, %43, %cst_26 {dimension_numbers = #tpu.dot_dimension_numbers<[0], [0], [1], [1], [0, 1, 1, 1], [], []>} : vector<32x3xf32>, vector<32x512xf32>, vector<3x512xf32> -> vector<3x512xf32>
    %45 = vector.broadcast %3 : vector<3x1xf32> to vector<3x512xf32>
    %46 = arith.mulf %44, %45 : vector<3x512xf32>
    %47 = vector.extract_strided_slice %46 {offsets = [0, 0], sizes = [2, 512], strides = [1, 1]} : vector<3x512xf32> to vector<2x512xf32>
    %48 = vector.broadcast %24 : vector<1x512xf32> to vector<2x512xf32>
    %49 = arith.mulf %48, %47 : vector<2x512xf32>
    %50 = arith.mulf %24, %24 : vector<1x512xf32>
    %51 = vector.extract_strided_slice %46 {offsets = [2, 0], sizes = [1, 512], strides = [1, 1]} : vector<3x512xf32> to vector<1x512xf32>
    %52 = arith.mulf %50, %51 : vector<1x512xf32>
    %53 = vector.broadcast %4 : vector<2x1xf32> to vector<2x512xf32>
    %54 = arith.subf %49, %53 : vector<2x512xf32>
    %55 = vector.broadcast %5 : vector<2x1xf32> to vector<2x512xf32>
    %56 = arith.mulf %54, %55 : vector<2x512xf32>
    %cst_27 = arith.constant dense<0.000000e+00> : vector<32x512xf32>
    %57 = tpu.matmul %17, %56, %cst_27 {dimension_numbers = #tpu.dot_dimension_numbers<[1], [0], [0], [1], [0, 0, 1, 1], [], []>} : vector<32x2xf32>, vector<2x512xf32>, vector<32x512xf32> -> vector<32x512xf32>
    %58 = vector.broadcast %14 : vector<32x1xf32> to vector<32x512xf32>
    %59 = vector.broadcast %25 : vector<1x512xf32> to vector<32x512xf32>
    %60 = arith.mulf %58, %59 : vector<32x512xf32>
    %61 = arith.addf %57, %60 : vector<32x512xf32>
    %62 = vector.broadcast %11 : vector<32x1xf32> to vector<32x512xf32>
    %63 = arith.addf %61, %62 : vector<32x512xf32>
    %64 = math.tanh %63 : vector<32x512xf32>
    %cst_28 = arith.constant dense<0.000000e+00> : vector<32x512xf32>
    %65 = tpu.matmul %18, %64, %cst_28 {dimension_numbers = #tpu.dot_dimension_numbers<[1], [0], [0], [1], [0, 0, 1, 1], [], []>} : vector<32x32xf32>, vector<32x512xf32>, vector<32x512xf32> -> vector<32x512xf32>
    %66 = vector.broadcast %12 : vector<32x1xf32> to vector<32x512xf32>
    %67 = arith.addf %65, %66 : vector<32x512xf32>
    %68 = math.tanh %67 : vector<32x512xf32>
    %cst_29 = arith.constant dense<0.000000e+00> : vector<2x512xf32>
    %69 = tpu.matmul %19, %68, %cst_29 {dimension_numbers = #tpu.dot_dimension_numbers<[1], [0], [0], [1], [0, 0, 1, 1], [], []>} : vector<2x32xf32>, vector<32x512xf32>, vector<2x512xf32> -> vector<2x512xf32>
    %70 = vector.broadcast %13 : vector<2x1xf32> to vector<2x512xf32>
    %71 = arith.addf %69, %70 : vector<2x512xf32>
    %72 = vector.broadcast %6 : vector<2x1xf32> to vector<2x512xf32>
    %73 = arith.mulf %71, %72 : vector<2x512xf32>
    %74 = vector.broadcast %7 : vector<2x1xf32> to vector<2x512xf32>
    %75 = arith.addf %73, %74 : vector<2x512xf32>
    %76 = arith.subf %1, %75 : vector<2x512xf32>
    %77 = vector.extract_strided_slice %1 {offsets = [0, 0], sizes = [1, 512], strides = [1, 1]} : vector<2x512xf32> to vector<1x512xf32>
    %78 = arith.mulf %24, %77 : vector<1x512xf32>
    %79 = arith.mulf %49, %76 : vector<2x512xf32>
    %cst_30 = arith.constant dense<0.000000e+00> : vector<512xf32>
    %80 = vector.multi_reduction <add>, %79, %cst_30 [0] : vector<2x512xf32> to vector<512xf32>
    %81 = vector.shape_cast %80 : vector<512xf32> to vector<1x512xf32>
    %82 = vector.extract_strided_slice %76 {offsets = [0, 0], sizes = [1, 512], strides = [1, 1]} : vector<2x512xf32> to vector<1x512xf32>
    %83 = arith.mulf %52, %82 : vector<1x512xf32>
    %84 = arith.addf %81, %83 : vector<1x512xf32>
    %c0_31 = arith.constant 0 : index
    %c0_32 = arith.constant 0 : index
    %85 = vector.load %arg3[%c0_31, %c0_32] : memref<4x512xf32, #tpu.memory_space<vmem>>, vector<2x512xf32>
    tpu.vector_store %arg3[%c0_31, %c0_32], %75 {strides = array<i32>} : memref<4x512xf32, #tpu.memory_space<vmem>>, vector<2x512xf32>,
    %c2_33 = arith.constant 2 : index
    %c0_34 = arith.constant 0 : index
    %86 = vector.load %arg3[%c2_33, %c0_34] : memref<4x512xf32, #tpu.memory_space<vmem>>, vector<1x512xf32>
    tpu.vector_store %arg3[%c2_33, %c0_34], %78 {strides = array<i32>} : memref<4x512xf32, #tpu.memory_space<vmem>>, vector<1x512xf32>,
    %c3_35 = arith.constant 3 : index
    %c0_36 = arith.constant 0 : index
    %87 = vector.load %arg3[%c3_35, %c0_36] : memref<4x512xf32, #tpu.memory_space<vmem>>, vector<1x512xf32>
    tpu.vector_store %arg3[%c3_35, %c0_36], %84 {strides = array<i32>} : memref<4x512xf32, #tpu.memory_space<vmem>>, vector<1x512xf32>,
    return
  }
  func.func @transform_0(%arg0: i32) -> (i32, i32) {
    %c0_i32 = arith.constant 0 : i32
    %c0_i32_0 = arith.constant 0 : i32
    return %c0_i32, %arg0 : i32, i32
  }
  func.func @transform_1(%arg0: i32) -> (i32, i32) {
    %c0_i32 = arith.constant 0 : i32
    %c0_i32_0 = arith.constant 0 : i32
    %c0_i32_1 = arith.constant 0 : i32
    return %c0_i32, %c0_i32_0 : i32, i32
  }
  func.func @transform_2(%arg0: i32) -> (i32, i32) {
    %c0_i32 = arith.constant 0 : i32
    %c0_i32_0 = arith.constant 0 : i32
    return %c0_i32, %arg0 : i32, i32
  }
}

</mosaic_0001>

<bundles_post_ra>
// kernel: nice_forward.1
= control target key start
LH: loop header
LB: loop body
LE: loop exit
PB: predicated region body
PF: predicated region fallthrough
CT: control target
= control target key end

     0   :  { %7 = vsyncpa [#allocation3], 0  ;;  %s2316_s0 = inlined_call_operand.vmem [shape: f32[8,512], index: 0, kind: input, shape index: {}]   ;;  %s2317_s1 = inlined_call_operand.hbm [shape: f32[168,128], index: 1, kind: input, shape index: {}]   ;;  %s2318_s2 = inlined_call_operand.hbm [shape: f32[4,512], index: 2, kind: output, shape index: {}]  }
   0x1   :  { %8 = vsyncpa [#allocation4], 0  ;;  %s15_s11 = sshll.u32 %s2317_s1, 4  ;;  %s1800_s12 = smov [#allocation2]   ;;  %s16_s11 = int_to_ptr.hbm [resolvable:$true] %s15_s11 }
   0x2   :  { %s17_s13 = sshll.u32 %s1800_s12, 4  ;;  %s1801_s14 = smov 128   ;;  %s18_s13 = int_to_ptr.vmem [resolvable:$true] %s17_s13 }
   0x3   :  { %s1802_s15 = smov 8  }
   0x4   :  { %23 = dma.hbm_to_vmem [thread:$0]  %s16_s11, 2688, %s18_s13, [#allocation3], %s1801_s14, %s1801_s14, %s1802_s15  }
   0x5   :  { %1796 = dma.done.wait [#allocation3], 2688  }
   0x6   :  { %1797 = vsyncadd [#allocation3], 4294964608  ;;  %v1803_v0 = vmov 7   ;;  %v1804_v1 = vmov 0   ;;  %v1835_v2 = vld [vmem:[#allocation2 + $0xa0] sm:$0xff]  ;;  %v1837_v3 = vld [vmem:[#allocation2 + $0x90] sm:$0xff] }
   0x7   :  { %1593 = vset.pattern.permute.xlu2 %v1803_v0  ;;  %1592 = vset.pattern.permute.xlu1 %v1803_v0  ;;  %v36_v4 = vld [vmem:[#allocation2 + $0x88] sm:$0x7]  ;;  %v1841_v5 = vld [vmem:[#allocation2 + $0x98] sm:$0xff]  ;;  %v1805_v7 = vmov 1   ;;  %v1806_v8 = vmov 8   ;;  %v1807_v9 = vmov 6  }
   0x8   :  { %1590 = vset.pattern.permute.xlu0 %v1804_v1  ;;  %93 = vperm.xlu1 %1592, %v1835_v2   ;;  %v1843_v6 = vld [vmem:[#allocation2 + $0x88] sm:$0xff]  ;;  %v1808_v11 = vmov 2   ;;  %v1809_v12 = vmov 3   ;;  %v1810_v13 = vmov 12   ;;  %v42_v14 = vld [vmem:[#allocation2] sm:$0xff]  ;;  %v44_v17 = vld [vmem:[#allocation2 + $0x10] sm:$0xff] }
   0x9   :  { %83 = vperm.xlu2 %1593, %v1837_v3   ;;  %61 = vperm.xlu0 %1590, %v36_v4   ;;  %v37_v10 = vld [vmem:[#allocation2 + $0x88] sm:$0x3]  ;;  %v1857_v16 = vld [vmem:[#allocation2 + $0x20] sm:$0xff]  ;;  %v45_v19 = vld [vmem:[#allocation2 + $0x18] sm:$0xff]  ;;  %vm109_vm0 = vcmask 1042432   ;;  %vm96_vm1 = vcmask 23552  }
   0xa   :  { %v43_v15 = vld [vmem:[#allocation2 + $0x8] sm:$0xff]  ;;  %v1863_v20 = vld [vmem:[#allocation2 + $0x30] sm:$0xff]  ;;  %v1866_v21 = vld [vmem:[#allocation2 + $0x38] sm:$0xff]  ;;  %vm270_vm2 = vcmask 261120   ;;  %vm888_vm3 = vcmask 1041408   ;;  %vm875_vm4 = vcmask 15360  }
   0xb   :  { %v1860_v18 = vld [vmem:[#allocation2 + $0x28] sm:$0xff]  ;;  %v1872_v23 = vld [vmem:[%s2316_s0] sm:$0x7]  ;;  %v1877_v24 = vld [vmem:[%s2316_s0 + $0x8] sm:$0x7]  ;;  %vm1422_vm5 = vcmask 1043456  }
   0xc   :  { %v1882_v25 = vld [vmem:[%s2316_s0 + $0x10] sm:$0x7]  ;;  %v1887_v26 = vld [vmem:[%s2316_s0 + $0x18] sm:$0x7]  ;;  %s1466_s14 = sshll.u32 %s2318_s2, 4  ;;  %s1467_s14 = int_to_ptr.hbm [resolvable:$true] %s1466_s14 }
  0x10   :  { %88 = vperm.xlu1 %1592, %v1841_v5  }
  0x11   :  { %78 = vperm.xlu2 %1593, %v1843_v6   ;;  %1591 = vset.pattern.permute.xlu0 %v1805_v7 }
  0x12   :  { %69 = vperm.xlu0 %1591, %v36_v4  }
  0x18   :  { %1594 = vset.pattern.permute.xlu1 %v1806_v8 }
  0x19   :  { %1595 = vset.pattern.permute.xlu2 %v1806_v8  ;;  %267 = vperm.xlu1 %1594, %v1835_v2  }
  0x1a   :  { %263 = vperm.xlu2 %1595, %v1841_v5   ;;  %1596 = vset.pattern.permute.xlu0 %v1806_v8 }
  0x1b   :  { %259 = vperm.xlu0 %1596, %v1837_v3  }
  0x21   :  { %255 = vperm.xlu1 %1594, %v1843_v6  }
  0x22   :  { %1597 = vset.pattern.permute.xlu2 %v1807_v9 }
  0x23   :  { %460 = vperm.xlu2 %1597, %v1835_v2   ;;  %1599 = vset.pattern.permute.xlu0 %v1807_v9 }
  0x24   :  { %448 = vperm.xlu0 %1599, %v1843_v6  }
  0x29   :  { %1598 = vset.pattern.permute.xlu1 %v1807_v9 }
  0x2a   :  { %456 = vperm.xlu1 %1598, %v1841_v5  }
  0x2b   :  { %452 = vperm.xlu2 %1597, %v1837_v3  }
  0x2c   :  { %1600 = vset.pattern.permute.xlu0 %v1808_v11 }
  0x2d   :  { %824 = vperm.xlu0 %1600, %v37_v10  }
  0x35   :  { %1601 = vset.pattern.permute.xlu0 %v1809_v12 }
  0x36   :  { %832 = vperm.xlu0 %1601, %v37_v10  }
  0x3e   :  { %1602 = vset.pattern.permute.xlu0 %v1810_v13 }
  0x3f   :  { %852 = vperm.xlu0 %1602, %v1835_v2  }
  0x47   :  { %844 = vperm.xlu0 %1602, %v1837_v3  }
  0x51   :  { %687 = vxpose.xlu2.b32.start [1/4] (short) (narrow) %v42_v14, 8 }
  0x59   :  { %688 = vxpose.xlu2.b32.cont [2/4] (short) (narrow) %v43_v15, 8 }
  0x5f   :  { %479 = vxpose.xlu1.b32.start [1/4] (short) (narrow) %v1857_v16, 32 }
  0x61   :  { %689 = vxpose.xlu2.b32.cont [3/4] (short) (narrow) %v44_v17, 8 }
  0x63   :  { %v84_v47 = vpop.permute.xlu2 %83 }
  0x67   :  { %480 = vxpose.xlu1.b32.cont [2/4] (short) (narrow) %v1860_v18, 32 }
  0x69   :  { %690 = vxpose.xlu2.b32.end [4/4] (short) (narrow) %v45_v19, 8 }
  0x6b   :  { %v79_v58 = vpop.permute.xlu2 %78 }
  0x6f   :  { %481 = vxpose.xlu1.b32.cont [3/4] (short) (narrow) %v1863_v20, 32 }
  0x77   :  { %482 = vxpose.xlu1.b32.end [4/4] (short) (narrow) %v1866_v21, 32 }
  0x7a   :  { %v94_v42 = vpop.permute.xlu1 %93 }
  0x7b   :  { %v62_v22 = vpop.permute.xlu0 %61 }
  0x7c   :  { %v64_v27 = vsub.f32 %v1872_v23, %v62_v22  ;;  %v65_v28 = vsub.f32 %v1877_v24, %v62_v22  ;;  %v66_v29 = vsub.f32 %v1882_v25, %v62_v22  ;;  %v67_v30 = vsub.f32 %v1887_v26, %v62_v22 }
  0x82   :  { %v89_v54 = vpop.permute.xlu1 %88 }
  0x84   :  { %v1893_v31 = vpop.permute.xlu0 %69 }
  0x85   :  { %v1896_v32 = vmul.f32 %v1893_v31, %v64_v27  ;;  %v1899_v33 = vmul.f32 %v1893_v31, %v65_v28  ;;  %v1902_v34 = vmul.f32 %v1893_v31, %v66_v29  ;;  %v1905_v35 = vmul.f32 %v1893_v31, %v67_v30 }
  0x87   :  { %1476 = vmatpush.msk.msra.mxu0 %vm109_vm0, %v1896_v32  ;;  %1481 = vmatpush.msk.msra.mxu1 %vm109_vm0, %v1899_v33 }
  0x88   :  { %1486 = vmatpush.msk.msra.mxu2 %vm109_vm0, %v1902_v34  ;;  %1491 = vmatpush.msk.msra.mxu3 %vm109_vm0, %v1905_v35 }
  0x89   :  { %1477 = vmatmul.msk.f32.vlgmr.msra.gmra.mxu0 %vm96_vm1, %v42_v14  ;;  %1482 = vmatmul.msk.f32.vlgmr.msra.gmra.mxu1 %vm96_vm1, %v42_v14 }
  0x8a   :  { %1487 = vmatmul.msk.f32.vlgmr.msra.gmra.mxu2 %vm96_vm1, %v42_v14  ;;  %1492 = vmatmul.msk.f32.vlgmr.msra.gmra.mxu3 %vm96_vm1, %v42_v14 }
  0x91   :  { %1478 = vmatmul.msk.f32.gmra.mxu0 %vm96_vm1, %v43_v15  ;;  %1483 = vmatmul.msk.f32.gmra.mxu1 %vm96_vm1, %v43_v15 }
  0x92   :  { %1488 = vmatmul.msk.f32.gmra.mxu2 %vm96_vm1, %v43_v15  ;;  %1493 = vmatmul.msk.f32.gmra.mxu3 %vm96_vm1, %v43_v15 }
  0x99   :  { %1479 = vmatmul.msk.f32.gmra.mxu0 %vm96_vm1, %v44_v17  ;;  %1484 = vmatmul.msk.f32.gmra.mxu1 %vm96_vm1, %v44_v17 }
  0x9a   :  { %1489 = vmatmul.msk.f32.gmra.mxu2 %vm96_vm1, %v44_v17  ;;  %1494 = vmatmul.msk.f32.gmra.mxu3 %vm96_vm1, %v44_v17 }
  0xa1   :  { %1480 = vmatmul.msk.f32.gmra.mxu0 %vm96_vm1, %v45_v19  ;;  %1485 = vmatmul.msk.f32.gmra.mxu1 %vm96_vm1, %v45_v19 }
  0xa2   :  { %1490 = vmatmul.msk.f32.gmra.mxu2 %vm96_vm1, %v45_v19  ;;  %1495 = vmatmul.msk.f32.gmra.mxu3 %vm96_vm1, %v45_v19 }
  0xca   :  { %1605 = vset.pattern.permute.xlu1 %v1810_v13 }
  0xcb   :  { %1603 = vset.pattern.permute.xlu2 %v1810_v13 }
  0xd1   :  { %840 = vperm.xlu1 %1605, %v1843_v6  }
  0xd2   :  { %848 = vperm.xlu2 %1603, %v1841_v5  }
 0x106   :  { %v139_v36 = vpop.f32.mrf.mxu0  ;;  %v168_v37 = vpop.f32.mrf.mxu1 }
 0x107   :  { %v140_v60 = vadd.f32 %v139_v36, %v79_v58  ;;  %v169_v61 = vadd.f32 %v168_v37, %v79_v58 }
 0x10d   :  { %v197_v38 = vpop.f32.mrf.mxu2  ;;  %v226_v39 = vpop.f32.mrf.mxu3 }
 0x10e   :  { %v142_v40 = vpop.f32.mrf.mxu0  ;;  %v171_v41 = vpop.f32.mrf.mxu1  ;;  %v198_v15 = vadd.f32 %v197_v38, %v79_v58  ;;  %v227_v19 = vadd.f32 %v226_v39, %v79_v58 }
 0x10f   :  { %v143_v48 = vadd.f32 %v142_v40, %v84_v47  ;;  %v172_v49 = vadd.f32 %v171_v41, %v84_v47 }
 0x111   :  { %1611 = vtanh.f32 %v143_v48 }
 0x112   :  { %1613 = vtanh.f32 %v172_v49  ;;  %v264_v49 = vpop.permute.xlu2 %263 }
 0x115   :  { %v200_v43 = vpop.f32.mrf.mxu2  ;;  %v229_v44 = vpop.f32.mrf.mxu3 }
 0x116   :  { %v145_v45 = vpop.f32.mrf.mxu0  ;;  %v174_v46 = vpop.f32.mrf.mxu1  ;;  %v201_v11 = vadd.f32 %v200_v43, %v84_v47  ;;  %v230_v13 = vadd.f32 %v229_v44, %v84_v47 }
 0x117   :  { %v146_v57 = vadd.f32 %v145_v45, %v89_v54  ;;  %v175_v59 = vadd.f32 %v174_v46, %v89_v54  ;;  %v1929_v0 = vpop.eup %1611  ;;  %v2009_v43 = vpop.permute.xlu1 %267 }
 0x118   :  { %v1931_v8 = vpop.eup %1613  ;;  %v260_v45 = vpop.permute.xlu0 %259 }
 0x11d   :  { %v203_v50 = vpop.f32.mrf.mxu2  ;;  %v232_v51 = vpop.f32.mrf.mxu3 }
 0x11e   :  { %v148_v52 = vpop.f32.mrf.mxu0  ;;  %v177_v53 = vpop.f32.mrf.mxu1  ;;  %v204_v1 = vadd.f32 %v203_v50, %v89_v54  ;;  %v233_v9 = vadd.f32 %v232_v51, %v89_v54 }
 0x11f   :  { %v149_v55 = vadd.f32 %v148_v52, %v94_v42  ;;  %v178_v56 = vadd.f32 %v177_v53, %v94_v42  ;;  %v256_v51 = vpop.permute.xlu1 %255 }
 0x121   :  { %1615 = vtanh.f32 %v149_v55 }
 0x122   :  { %1617 = vtanh.f32 %v178_v56 }
 0x123   :  { %1619 = vtanh.f32 %v146_v57 }
 0x124   :  { %1621 = vtanh.f32 %v175_v59 }
 0x125   :  { %v206_v62 = vpop.f32.mrf.mxu2  ;;  %v235_v63 = vpop.f32.mrf.mxu3  ;;  %1623 = vtanh.f32 %v140_v60 }
 0x126   :  { %v207_v4 = vadd.f32 %v206_v62, %v94_v42  ;;  %v236_v7 = vadd.f32 %v235_v63, %v94_v42  ;;  %1625 = vtanh.f32 %v169_v61 }
 0x127   :  { %v1933_v10 = vpop.eup %1615 }
 0x128   :  { %1627 = vtanh.f32 %v207_v4  ;;  %v1935_v12 = vpop.eup %1617  ;;  %295 = vmatpush.msrb.mxu0 %v1933_v10 }
 0x129   :  { %1629 = vtanh.f32 %v236_v7  ;;  %v1938_v14 = vpop.eup %1619  ;;  %324 = vmatpush.msrb.mxu1 %v1935_v12 }
 0x12a   :  { %1631 = vtanh.f32 %v204_v1  ;;  %v1941_v17 = vpop.eup %1621  ;;  %296 = vmatpush.msrb.mxu0 %v1938_v14 }
 0x12b   :  { %1633 = vtanh.f32 %v233_v9  ;;  %v1944_v22 = vpop.eup %1623  ;;  %325 = vmatpush.msrb.mxu1 %v1941_v17  ;;  %v2013_v9 = vpop.permute.xlu2 %460 }
 0x12c   :  { %1635 = vtanh.f32 %v201_v11  ;;  %v1947_v27 = vpop.eup %1625  ;;  %297 = vmatpush.msrb.mxu0 %v1929_v0 }
 0x12d   :  { %1637 = vtanh.f32 %v230_v13  ;;  %326 = vmatpush.msrb.mxu1 %v1931_v8 }
 0x12e   :  { %v1950_v28 = vpop.eup %1627  ;;  %1639 = vtanh.f32 %v198_v15  ;;  %298 = vmatpush.msrb.mxu0 %v1944_v22  ;;  %v2015_v15 = vpop.permute.xlu1 %456 }
 0x12f   :  { %v1953_v29 = vpop.eup %1629  ;;  %1641 = vtanh.f32 %v227_v19  ;;  %353 = vmatpush.msrb.mxu2 %v1950_v28  ;;  %327 = vmatpush.msrb.mxu1 %v1947_v27 }
 0x130   :  { %v1957_v30 = vpop.eup %1631  ;;  %382 = vmatpush.msrb.mxu3 %v1953_v29  ;;  %1496 = vmatmul.msk.f32.vlgmr.msrb.gmra.mxu0 %vm270_vm2, %v1857_v16 }
 0x131   :  { %v1961_v36 = vpop.eup %1633  ;;  %1500 = vmatmul.msk.f32.vlgmr.msrb.gmra.mxu1 %vm270_vm2, %v1857_v16  ;;  %354 = vmatpush.msrb.mxu2 %v1957_v30 }
 0x132   :  { %v1967_v37 = vpop.eup %1635  ;;  %383 = vmatpush.msrb.mxu3 %v1961_v36 }
 0x133   :  { %v1971_v38 = vpop.eup %1637  ;;  %355 = vmatpush.msrb.mxu2 %v1967_v37 }
 0x134   :  { %v1973_v39 = vpop.eup %1639  ;;  %384 = vmatpush.msrb.mxu3 %v1971_v38 }
 0x135   :  { %v1977_v40 = vpop.eup %1641  ;;  %356 = vmatpush.msrb.mxu2 %v1973_v39 }
 0x136   :  { %385 = vmatpush.msrb.mxu3 %v1977_v40  ;;  %1504 = vmatmul.msk.f32.vlgmr.msrb.gmra.mxu2 %vm270_vm2, %v1857_v16 }
 0x137   :  { %1508 = vmatmul.msk.f32.vlgmr.msrb.gmra.mxu3 %vm270_vm2, %v1857_v16 }
 0x138   :  { %1497 = vmatmul.msk.f32.gmra.mxu0 %vm270_vm2, %v1860_v18 }
 0x139   :  { %1501 = vmatmul.msk.f32.gmra.mxu1 %vm270_vm2, %v1860_v18 }
 0x13e   :  { %1505 = vmatmul.msk.f32.gmra.mxu2 %vm270_vm2, %v1860_v18 }
 0x13f   :  { %1509 = vmatmul.msk.f32.gmra.mxu3 %vm270_vm2, %v1860_v18 }
 0x140   :  { %1498 = vmatmul.msk.f32.gmra.mxu0 %vm270_vm2, %v1863_v20 }
 0x141   :  { %1502 = vmatmul.msk.f32.gmra.mxu1 %vm270_vm2, %v1863_v20 }
 0x146   :  { %1506 = vmatmul.msk.f32.gmra.mxu2 %vm270_vm2, %v1863_v20 }
 0x147   :  { %1510 = vmatmul.msk.f32.gmra.mxu3 %vm270_vm2, %v1863_v20 }
 0x148   :  { %1499 = vmatmul.msk.f32.gmra.mxu0 %vm270_vm2, %v1866_v21 }
 0x149   :  { %1503 = vmatmul.msk.f32.gmra.mxu1 %vm270_vm2, %v1866_v21 }
 0x14e   :  { %1507 = vmatmul.msk.f32.gmra.mxu2 %vm270_vm2, %v1866_v21 }
 0x14f   :  { %1511 = vmatmul.msk.f32.gmra.mxu3 %vm270_vm2, %v1866_v21 }
 0x1ad   :  { %v300_v16 = vpop.f32.mrf.mxu0 }
 0x1ae   :  { %v329_v18 = vpop.f32.mrf.mxu1  ;;  %v301_v21 = vadd.f32 %v300_v16, %v256_v51 }
 0x1af   :  { %v330_v56 = vadd.f32 %v329_v18, %v256_v51 }
 0x1b5   :  { %v303_v41 = vpop.f32.mrf.mxu0 }
 0x1b6   :  { %v332_v42 = vpop.f32.mrf.mxu1  ;;  %v304_v48 = vadd.f32 %v303_v41, %v260_v45 }
 0x1b7   :  { %v333_v50 = vadd.f32 %v332_v42, %v260_v45 }
 0x1b8   :  { %1643 = vtanh.f32 %v304_v48 }
 0x1b9   :  { %v358_v44 = vpop.f32.mrf.mxu2  ;;  %1645 = vtanh.f32 %v333_v50 }
 0x1ba   :  { %v387_v20 = vpop.f32.mrf.mxu3  ;;  %v359_v63 = vadd.f32 %v358_v44, %v256_v51 }
 0x1bb   :  { %v388_v11 = vadd.f32 %v387_v20, %v256_v51 }
 0x1bd   :  { %v306_v46 = vpop.f32.mrf.mxu0 }
 0x1be   :  { %v335_v47 = vpop.f32.mrf.mxu1  ;;  %v307_v52 = vadd.f32 %v306_v46, %v264_v49  ;;  %v1644_v61 = vpop.eup %1643 }
 0x1bf   :  { %v336_v53 = vadd.f32 %v335_v47, %v264_v49  ;;  %v1646_v62 = vpop.eup %1645  ;;  %v419_v18 = vmul.f32 %v1644_v61, %v1644_v61 }
 0x1c0   :  { %1647 = vtanh.f32 %v307_v52  ;;  %v420_v46 = vmul.f32 %v1646_v62, %v1646_v62 }
 0x1c1   :  { %v361_v54 = vpop.f32.mrf.mxu2  ;;  %1649 = vtanh.f32 %v336_v53 }
 0x1c2   :  { %v390_v55 = vpop.f32.mrf.mxu3  ;;  %1651 = vtanh.f32 %v301_v21  ;;  %v362_v19 = vadd.f32 %v361_v54, %v260_v45  ;;  %v436_v54 = vsub.f32 1.0, %v420_v46 }
 0x1c3   :  { %1653 = vtanh.f32 %v330_v56  ;;  %v391_v21 = vadd.f32 %v390_v55, %v260_v45  ;;  %v435_v56 = vsub.f32 1.0, %v419_v18 }
 0x1c5   :  { %v309_v57 = vpop.f32.mrf.mxu0 }
 0x1c6   :  { %v338_v58 = vpop.f32.mrf.mxu1  ;;  %v310_v59 = vadd.f32 %v309_v57, %v2009_v43  ;;  %v1648_v7 = vpop.eup %1647 }
 0x1c7   :  { %v339_v60 = vadd.f32 %v338_v58, %v2009_v43  ;;  %v1650_v13 = vpop.eup %1649  ;;  %v423_v47 = vmul.f32 %v1648_v7, %v1648_v7  ;;  %v453_v7 = vpop.permute.xlu2 %452 }
 0x1c8   :  { %1655 = vtanh.f32 %v310_v59  ;;  %v1652_v16 = vpop.eup %1651  ;;  %v424_v50 = vmul.f32 %v1650_v13, %v1650_v13 }
 0x1c9   :  { %1657 = vtanh.f32 %v339_v60  ;;  %v364_v1 = vpop.f32.mrf.mxu2  ;;  %v1654_v42 = vpop.eup %1653  ;;  %v415_v53 = vmul.f32 %v1652_v16, %v1652_v16  ;;  %v439_v58 = vsub.f32 1.0, %v423_v47  ;;  %v468_v47 = vmul.f32 %v453_v7, %v436_v54 }
 0x1ca   :  { %v393_v4 = vpop.f32.mrf.mxu3  ;;  %v365_v41 = vadd.f32 %v364_v1, %v264_v49  ;;  %1659 = vtanh.f32 %v359_v63  ;;  %v416_v51 = vmul.f32 %v1654_v42, %v1654_v42  ;;  %v440_v62 = vsub.f32 1.0, %v424_v50 }
 0x1cb   :  { %v394_v48 = vadd.f32 %v393_v4, %v264_v49  ;;  %1661 = vtanh.f32 %v388_v11  ;;  %v431_v16 = vsub.f32 1.0, %v415_v53  ;;  %v471_v18 = vmul.f32 %v2015_v15, %v439_v58 }
 0x1cc   :  { %1663 = vtanh.f32 %v362_v19  ;;  %v2021_v19 = vpop.trf.xlu1  ;;  %v472_v46 = vmul.f32 %v2015_v15, %v440_v62 }
 0x1cd   :  { %1665 = vtanh.f32 %v365_v41  ;;  %v467_v41 = vmul.f32 %v453_v7, %v435_v56 }
 0x1ce   :  { %v1656_v44 = vpop.eup %1655  ;;  %1667 = vtanh.f32 %v394_v48 }
 0x1cf   :  { %v1658_v52 = vpop.eup %1657  ;;  %v427_v20 = vmul.f32 %v1656_v44, %v1656_v44  ;;  %1669 = vtanh.f32 %v391_v21  ;;  %v449_v44 = vpop.permute.xlu0 %448 }
 0x1d0   :  { %v428_v57 = vmul.f32 %v1658_v52, %v1658_v52  ;;  %v1660_v4 = vpop.eup %1659  ;;  %v463_v21 = vmul.f32 %v449_v44, %v431_v16 }
 0x1d1   :  { %v443_v59 = vsub.f32 1.0, %v427_v20  ;;  %v367_v60 = vpop.f32.mrf.mxu2  ;;  %v1662_v55 = vpop.eup %1661  ;;  %v417_v54 = vmul.f32 %v1660_v4, %v1660_v4 }
 0x1d2   :  { %v396_v61 = vpop.f32.mrf.mxu3  ;;  %v444_v49 = vsub.f32 1.0, %v428_v57  ;;  %v368_v63 = vadd.f32 %v367_v60, %v2009_v43  ;;  %v1664_v13 = vpop.eup %1663 }
 0x1d3   :  { %v397_v1 = vadd.f32 %v396_v61, %v2009_v43  ;;  %v475_v45 = vmul.f32 %v2013_v9, %v443_v59  ;;  %v1666_v42 = vpop.eup %1665  ;;  %v432_v43 = vsub.f32 1.0, %v416_v51  ;;  %v421_v56 = vmul.f32 %v1664_v13, %v1664_v13 }
 0x1d4   :  { %v476_v11 = vmul.f32 %v2013_v9, %v444_v49  ;;  %1671 = vtanh.f32 %v368_v63  ;;  %v1668_v48 = vpop.eup %1667  ;;  %v425_v52 = vmul.f32 %v1666_v42, %v1666_v42  ;;  %v418_v49 = vmul.f32 %v1662_v55, %v1662_v55 }
 0x1d5   :  { %1673 = vtanh.f32 %v397_v1  ;;  %535 = vmatpush.msra.mxu0 %v475_v45  ;;  %v1670_v50 = vpop.eup %1669  ;;  %v426_v20 = vmul.f32 %v1668_v48, %v1668_v48  ;;  %v464_v57 = vmul.f32 %v449_v44, %v432_v43  ;;  %v496_v45 = vpop.trf.xlu1 }
 0x1d6   :  { %564 = vmatpush.msra.mxu1 %v476_v11  ;;  %v422_v51 = vmul.f32 %v1670_v50, %v1670_v50  ;;  %v441_v61 = vsub.f32 1.0, %v425_v52  ;;  %v437_v11 = vsub.f32 1.0, %v421_v56  ;;  %v434_v4 = vsub.f32 1.0, %v418_v49 }
 0x1d7   :  { %536 = vmatpush.msra.mxu0 %v471_v18  ;;  %v442_v63 = vsub.f32 1.0, %v426_v20  ;;  %v647_v56 = vmul.f32 %v1938_v14, %v1938_v14 }
 0x1d8   :  { %565 = vmatpush.msra.mxu1 %v472_v46  ;;  %v438_v16 = vsub.f32 1.0, %v422_v51  ;;  %v473_v42 = vmul.f32 %v2015_v15, %v441_v61  ;;  %v469_v46 = vmul.f32 %v453_v7, %v437_v11  ;;  %v1811_v51 = vmov 9  }
 0x1d9   :  { %537 = vmatpush.msra.mxu0 %v467_v41  ;;  %v433_v41 = vsub.f32 1.0, %v417_v54  ;;  %v474_v43 = vmul.f32 %v2015_v15, %v442_v63  ;;  %1604 = vset.pattern.permute.xlu0 %v1811_v51  ;;  %v663_v14 = vsub.f32 1.0, %v647_v56 }
 0x1da   :  { %v1672_v53 = vpop.eup %1671  ;;  %566 = vmatpush.msra.mxu1 %v468_v47  ;;  %v470_v55 = vmul.f32 %v453_v7, %v438_v16  ;;  %1030 = vperm.xlu0 %1604, %v1835_v2  }
 0x1db   :  { %v1674_v58 = vpop.eup %1673  ;;  %v429_v59 = vmul.f32 %v1672_v53, %v1672_v53  ;;  %538 = vmatpush.msra.mxu0 %v463_v21  ;;  %v465_v47 = vmul.f32 %v449_v44, %v433_v41 }
 0x1dc   :  { %v430_v60 = vmul.f32 %v1674_v58, %v1674_v58  ;;  %567 = vmatpush.msra.mxu1 %v464_v57  ;;  %1512 = vmatmul.msk.f32.vlgmr.msra.gmra.mxu0 %vm270_vm2, %v2021_v19  ;;  %v651_v57 = vmul.f32 %v1933_v10, %v1933_v10  ;;  %v652_v58 = vmul.f32 %v1935_v12, %v1935_v12 }
 0x1dd   :  { %v445_v62 = vsub.f32 1.0, %v429_v59  ;;  %1516 = vmatmul.msk.f32.vlgmr.msra.gmra.mxu1 %vm270_vm2, %v2021_v19  ;;  %v497_v48 = vpop.trf.xlu1  ;;  %v648_v59 = vmul.f32 %v1941_v17, %v1941_v17  ;;  %v644_v10 = vmul.f32 %v1931_v8, %v1931_v8  ;;  %v639_v12 = vmul.f32 %v1944_v22, %v1944_v22 }
 0x1de   :  { %v446_v1 = vsub.f32 1.0, %v430_v60  ;;  %v643_v60 = vmul.f32 %v1929_v0, %v1929_v0  ;;  %v667_v54 = vsub.f32 1.0, %v651_v57  ;;  %v640_v17 = vmul.f32 %v1947_v27, %v1947_v27 }
 0x1df   :  { %v477_v13 = vmul.f32 %v2013_v9, %v445_v62  ;;  %v668_v62 = vsub.f32 1.0, %v652_v58  ;;  %v660_v16 = vsub.f32 1.0, %v644_v10  ;;  %v806_v10 = vperm.slane %v1872_v23, 2 }
 0x1e0   :  { %v478_v18 = vmul.f32 %v2013_v9, %v446_v1  ;;  %v466_v9 = vmul.f32 %v449_v44, %v434_v4  ;;  %v664_v1 = vsub.f32 1.0, %v648_v59  ;;  %v659_v11 = vsub.f32 1.0, %v643_v60 }
 0x1e1   :  { %593 = vmatpush.msra.mxu2 %v477_v13  ;;  %v656_v22 = vsub.f32 1.0, %v640_v17  ;;  %v50_v17 = vld [vmem:[#allocation2 + $0x40] sm:$0xff] }
 0x1e2   :  { %622 = vmatpush.msra.mxu3 %v478_v18  ;;  %v655_v18 = vsub.f32 1.0, %v639_v12  ;;  %1026 = vperm.xlu0 %1604, %v1841_v5   ;;  %v649_v5 = vmul.f32 %v1957_v30, %v1957_v30 }
 0x1e3   :  { %594 = vmatpush.msra.mxu2 %v473_v42 }
 0x1e4   :  { %623 = vmatpush.msra.mxu3 %v474_v43  ;;  %1513 = vmatmul.msk.f32.gmra.mxu0 %vm270_vm2, %v496_v45  ;;  %v703_v43 = vpop.trf.xlu2 }
 0x1e5   :  { %1517 = vmatmul.msk.f32.gmra.mxu1 %vm270_vm2, %v496_v45  ;;  %595 = vmatpush.msra.mxu2 %v469_v46  ;;  %v498_v15 = vpop.trf.xlu1 }
 0x1e6   :  { %624 = vmatpush.msra.mxu3 %v470_v55 }
 0x1e7   :  { %596 = vmatpush.msra.mxu2 %v465_v47  ;;  %v653_v47 = vmul.f32 %v1950_v28, %v1950_v28 }
 0x1e8   :  { %625 = vmatpush.msra.mxu3 %v466_v9  ;;  %1520 = vmatmul.msk.f32.vlgmr.msra.gmra.mxu2 %vm270_vm2, %v2021_v19  ;;  %v654_v9 = vmul.f32 %v1953_v29, %v1953_v29  ;;  %v641_v29 = vmul.f32 %v1973_v39, %v1973_v39 }
 0x1e9   :  { %1524 = vmatmul.msk.f32.vlgmr.msra.gmra.mxu3 %vm270_vm2, %v2021_v19 }
 0x1ea   :  { %1022 = vperm.xlu0 %1604, %v1837_v3   ;;  %v670_v28 = vsub.f32 1.0, %v654_v9  ;;  %v642_v3 = vmul.f32 %v1977_v40, %v1977_v40 }
 0x1ec   :  { %1514 = vmatmul.msk.f32.gmra.mxu0 %vm270_vm2, %v497_v48  ;;  %v658_v39 = vsub.f32 1.0, %v642_v3 }
 0x1ed   :  { %1518 = vmatmul.msk.f32.gmra.mxu1 %vm270_vm2, %v497_v48 }
 0x1f0   :  { %1521 = vmatmul.msk.f32.gmra.mxu2 %vm270_vm2, %v496_v45 }
 0x1f1   :  { %1525 = vmatmul.msk.f32.gmra.mxu3 %vm270_vm2, %v496_v45 }
 0x1f2   :  { %1018 = vperm.xlu0 %1604, %v1843_v6   ;;  %v807_v6 = vperm.slane %v1877_v24, 2 }
 0x1f4   :  { %1515 = vmatmul.msk.f32.gmra.mxu0 %vm270_vm2, %v498_v15 }
 0x1f5   :  { %1519 = vmatmul.msk.f32.gmra.mxu1 %vm270_vm2, %v498_v15 }
 0x1f8   :  { %1522 = vmatmul.msk.f32.gmra.mxu2 %vm270_vm2, %v497_v48 }
 0x1f9   :  { %1526 = vmatmul.msk.f32.gmra.mxu3 %vm270_vm2, %v497_v48  ;;  %v650_v48 = vmul.f32 %v1961_v36, %v1961_v36 }
 0x200   :  { %1523 = vmatmul.msk.f32.gmra.mxu2 %vm270_vm2, %v498_v15 }
 0x201   :  { %1527 = vmatmul.msk.f32.gmra.mxu3 %vm270_vm2, %v498_v15  ;;  %v645_v15 = vmul.f32 %v1967_v37, %v1967_v37 }
 0x203   :  { %v661_v57 = vsub.f32 1.0, %v645_v15 }
 0x259   :  { %v540_v7 = vpop.f32.mrf.mxu0 }
 0x25a   :  { %v569_v19 = vpop.f32.mrf.mxu1  ;;  %v671_v4 = vmul.f32 %v655_v18, %v540_v7  ;;  %v669_v7 = vsub.f32 1.0, %v653_v47 }
 0x25b   :  { %v672_v27 = vmul.f32 %v656_v22, %v569_v19  ;;  %v646_v19 = vmul.f32 %v1971_v38, %v1971_v38  ;;  %v657_v38 = vsub.f32 1.0, %v641_v29  ;;  %v856_v29 = vperm.slane %v1899_v33, 2 }
 0x25d   :  { %v662_v37 = vsub.f32 1.0, %v646_v19  ;;  %v2155_v19 = vpop.permute.xlu2 %848 }
 0x261   :  { %v543_v44 = vpop.f32.mrf.mxu0 }
 0x262   :  { %v572_v50 = vpop.f32.mrf.mxu1  ;;  %v675_v41 = vmul.f32 %v659_v11, %v543_v44  ;;  %v52_v11 = vld [vmem:[#allocation2 + $0x50] sm:$0xff] }
 0x263   :  { %v676_v42 = vmul.f32 %v660_v16, %v572_v50  ;;  %v665_v50 = vsub.f32 1.0, %v649_v5 }
 0x269   :  { %v546_v52 = vpop.f32.mrf.mxu0 }
 0x26a   :  { %v575_v21 = vpop.f32.mrf.mxu1  ;;  %v679_v13 = vmul.f32 %v663_v14, %v546_v52 }
 0x26b   :  { %v2049_v53 = vpop.f32.mrf.mxu2  ;;  %v680_v8 = vmul.f32 %v664_v1, %v575_v21  ;;  %v666_v21 = vsub.f32 1.0, %v650_v48 }
 0x26c   :  { %v2051_v20 = vpop.f32.mrf.mxu3  ;;  %v673_v60 = vmul.f32 %v657_v38, %v2049_v53 }
 0x26d   :  { %v674_v40 = vmul.f32 %v658_v39, %v2051_v20 }
 0x271   :  { %v549_v61 = vpop.f32.mrf.mxu0 }
 0x272   :  { %v683_v49 = vmul.f32 %v667_v54, %v549_v61  ;;  %v578_v63 = vpop.f32.mrf.mxu1  ;;  %v825_v54 = vpop.permute.xlu0 %824 }
 0x273   :  { %v684_v45 = vmul.f32 %v668_v62, %v578_v63  ;;  %v601_v0 = vpop.f32.mrf.mxu2 }
 0x274   :  { %v630_v2 = vpop.f32.mrf.mxu3  ;;  %734 = vmatpush.msrb.mxu0 %v683_v49  ;;  %v677_v59 = vmul.f32 %v661_v57, %v601_v0  ;;  %v808_v0 = vperm.slane %v1882_v25, 2 }
 0x275   :  { %754 = vmatpush.msrb.mxu1 %v684_v45  ;;  %v678_v51 = vmul.f32 %v662_v37, %v630_v2  ;;  %v51_v45 = vld [vmem:[#allocation2 + $0x48] sm:$0xff]  ;;  %v809_v2 = vperm.slane %v1887_v26, 2 }
 0x276   :  { %735 = vmatpush.msrb.mxu0 %v679_v13 }
 0x277   :  { %755 = vmatpush.msrb.mxu1 %v680_v8 }
 0x278   :  { %736 = vmatpush.msrb.mxu0 %v675_v41 }
 0x279   :  { %756 = vmatpush.msrb.mxu1 %v676_v42 }
 0x27a   :  { %737 = vmatpush.msrb.mxu0 %v671_v4  ;;  %v833_v63 = vpop.permute.xlu0 %832  ;;  %v53_v4 = vld [vmem:[#allocation2 + $0x58] sm:$0xff] }
 0x27b   :  { %757 = vmatpush.msrb.mxu1 %v672_v27  ;;  %v604_v46 = vpop.f32.mrf.mxu2  ;;  %1528 = vmatmul.msk.f32.vlgmr.msrb.gmra.mxu0 %vm270_vm2, %v703_v43 }
 0x27c   :  { %v633_v55 = vpop.f32.mrf.mxu3  ;;  %1529 = vmatmul.msk.f32.vlgmr.msrb.gmra.mxu1 %vm270_vm2, %v703_v43  ;;  %v681_v58 = vmul.f32 %v665_v50, %v604_v46 }
 0x27d   :  { %v682_v56 = vmul.f32 %v666_v21, %v633_v55 }
 0x283   :  { %v607_v44 = vpop.f32.mrf.mxu2 }
 0x284   :  { %v685_v52 = vmul.f32 %v669_v7, %v607_v44  ;;  %v636_v30 = vpop.f32.mrf.mxu3 }
 0x285   :  { %v686_v36 = vmul.f32 %v670_v28, %v636_v30  ;;  %v855_v28 = vperm.slane %v1896_v32, 2  ;;  %v868_v30 = vmul.f32 %v856_v29, %v2155_v19 }
 0x286   :  { %774 = vmatpush.msrb.mxu2 %v685_v52  ;;  %v2162_v52 = vpop.permute.xlu1 %840 }
 0x287   :  { %794 = vmatpush.msrb.mxu3 %v686_v36  ;;  %v867_v50 = vmul.f32 %v855_v28, %v2155_v19  ;;  %v859_v32 = vmul.f32 %v855_v28, %v2162_v52  ;;  %v860_v39 = vmul.f32 %v856_v29, %v2162_v52 }
 0x288   :  { %775 = vmatpush.msrb.mxu2 %v681_v58 }
 0x289   :  { %795 = vmatpush.msrb.mxu3 %v682_v56 }
 0x28a   :  { %776 = vmatpush.msrb.mxu2 %v677_v59 }
 0x28b   :  { %796 = vmatpush.msrb.mxu3 %v678_v51 }
 0x28c   :  { %777 = vmatpush.msrb.mxu2 %v673_v60 }
 0x28d   :  { %797 = vmatpush.msrb.mxu3 %v674_v40  ;;  %1530 = vmatmul.msk.f32.vlgmr.msrb.gmra.mxu2 %vm270_vm2, %v703_v43 }
 0x28e   :  { %1531 = vmatmul.msk.f32.vlgmr.msrb.gmra.mxu3 %vm270_vm2, %v703_v43 }
 0x2f8   :  { %v739_v61 = vpop.f32.mrf.mxu0 }
 0x2f9   :  { %v2098_v62 = vmul.f32 %v739_v61, %v1893_v31  ;;  %v759_v53 = vpop.f32.mrf.mxu1 }
 0x2fa   :  { %v2101_v12 = vmul.f32 %v759_v53, %v1893_v31 }
 0x2fb   :  { %v2104_v20 = vmul.f32 %v806_v10, %v2098_v62 }
 0x2fc   :  { %v2107_v14 = vmul.f32 %v807_v6, %v2101_v12 }
 0x2fd   :  { %v827_v49 = vsub.f32 %v2104_v20, %v825_v54 }
 0x2fe   :  { %v828_v23 = vsub.f32 %v2107_v14, %v825_v54 }
 0x2ff   :  { %v835_v24 = vmul.f32 %v833_v63, %v827_v49 }
 0x300   :  { %v836_v1 = vmul.f32 %v833_v63, %v828_v23  ;;  %v1812_v23 = vmov 10  }
 0x301   :  { %1532 = vmatpush.msk.msra.mxu0 %vm888_vm3, %v835_v24  ;;  %1606 = vset.pattern.permute.xlu0 %v1812_v23 }
 0x302   :  { %1537 = vmatpush.msk.msra.mxu1 %vm888_vm3, %v836_v1  ;;  %1533 = vmatmul.msk.f32.vlgmr.msra.gmra.mxu0 %vm875_vm4, %v50_v17 }
 0x303   :  { %1538 = vmatmul.msk.f32.vlgmr.msra.gmra.mxu1 %vm875_vm4, %v50_v17 }
 0x30a   :  { %1534 = vmatmul.msk.f32.gmra.mxu0 %vm875_vm4, %v51_v45 }
 0x30b   :  { %1539 = vmatmul.msk.f32.gmra.mxu1 %vm875_vm4, %v51_v45 }
 0x310   :  { %v779_v13 = vpop.f32.mrf.mxu2 }
 0x311   :  { %v2120_v16 = vmul.f32 %v779_v13, %v1893_v31  ;;  %v799_v8 = vpop.f32.mrf.mxu3 }
 0x312   :  { %v2123_v18 = vmul.f32 %v799_v8, %v1893_v31  ;;  %1535 = vmatmul.msk.f32.gmra.mxu0 %vm875_vm4, %v52_v11  ;;  %v2147_v31 = vpop.permute.xlu0 %852 }
 0x313   :  { %v2127_v41 = vmul.f32 %v808_v0, %v2120_v16  ;;  %1540 = vmatmul.msk.f32.gmra.mxu1 %vm875_vm4, %v52_v11  ;;  %v871_v36 = vmul.f32 %v855_v28, %v2147_v31  ;;  %v872_v56 = vmul.f32 %v856_v29, %v2147_v31 }
 0x314   :  { %v2131_v25 = vmul.f32 %v809_v2, %v2123_v18 }
 0x315   :  { %v829_v22 = vsub.f32 %v2127_v41, %v825_v54 }
 0x316   :  { %v830_v26 = vsub.f32 %v2131_v25, %v825_v54 }
 0x317   :  { %v837_v42 = vmul.f32 %v833_v63, %v829_v22 }
 0x318   :  { %v838_v27 = vmul.f32 %v833_v63, %v830_v26  ;;  %v1740_v26 = vld [vmem:[#allocation2 + $0x98] sm:$0xff] }
 0x319   :  { %1542 = vmatpush.msk.msra.mxu2 %vm888_vm3, %v837_v42 }
 0x31a   :  { %1547 = vmatpush.msk.msra.mxu3 %vm888_vm3, %v838_v27  ;;  %1536 = vmatmul.msk.f32.gmra.mxu0 %vm875_vm4, %v53_v4  ;;  %v2149_v43 = vpop.permute.xlu0 %844 }
 0x31b   :  { %1541 = vmatmul.msk.f32.gmra.mxu1 %vm875_vm4, %v53_v4  ;;  %1543 = vmatmul.msk.f32.vlgmr.msra.gmra.mxu2 %vm875_vm4, %v50_v17  ;;  %v863_v3 = vmul.f32 %v855_v28, %v2149_v43  ;;  %v864_v57 = vmul.f32 %v856_v29, %v2149_v43  ;;  %v2187_v29 = vld [vmem:[#allocation2 + $0x68] sm:$0xff] }
 0x31c   :  { %1548 = vmatmul.msk.f32.vlgmr.msra.gmra.mxu3 %vm875_vm4, %v50_v17  ;;  %v1739_v17 = vld [vmem:[#allocation2 + $0xa0] sm:$0xff] }
 0x31d   :  { %1078 = vperm.xlu0 %1606, %v1739_v17  }
 0x322   :  { %v2151_v46 = vpop.permute.xlu0 %1030 }
 0x323   :  { %1544 = vmatmul.msk.f32.gmra.mxu2 %vm875_vm4, %v51_v45 }
 0x324   :  { %1549 = vmatmul.msk.f32.gmra.mxu3 %vm875_vm4, %v51_v45 }
 0x325   :  { %1074 = vperm.xlu0 %1606, %v1740_v26  }
 0x32a   :  { %v2153_v9 = vpop.permute.xlu0 %1026 }
 0x32b   :  { %1545 = vmatmul.msk.f32.gmra.mxu2 %vm875_vm4, %v52_v11 }
 0x32c   :  { %1550 = vmatmul.msk.f32.gmra.mxu3 %vm875_vm4, %v52_v11 }
 0x332   :  { %v2157_v44 = vpop.permute.xlu0 %1022 }
 0x333   :  { %1546 = vmatmul.msk.f32.gmra.mxu2 %vm875_vm4, %v53_v4 }
 0x334   :  { %1551 = vmatmul.msk.f32.gmra.mxu3 %vm875_vm4, %v53_v4 }
 0x33a   :  { %v2173_v6 = vpop.permute.xlu0 %1018 }
 0x37f   :  { %v918_v55 = vpop.f32.mrf.mxu0 }
 0x380   :  { %v947_v47 = vpop.f32.mrf.mxu1  ;;  %v919_v40 = vadd.f32 %v918_v55, %v859_v32 }
 0x381   :  { %v948_v61 = vadd.f32 %v947_v47, %v860_v39  ;;  %v2181_v47 = vld [vmem:[#allocation2 + $0x60] sm:$0xff] }
 0x382   :  { %v1033_v1 = vadd.f32 %v2173_v6, %v919_v40 }
 0x383   :  { %v1034_v0 = vadd.f32 %v2173_v6, %v948_v61 }
 0x387   :  { %v921_v5 = vpop.f32.mrf.mxu0 }
 0x388   :  { %v950_v48 = vpop.f32.mrf.mxu1  ;;  %v922_v33 = vadd.f32 %v921_v5, %v863_v3 }
 0x389   :  { %v951_v51 = vadd.f32 %v950_v48, %v864_v57 }
 0x38a   :  { %v1037_v63 = vadd.f32 %v2157_v44, %v922_v33 }
 0x38b   :  { %v1038_v24 = vadd.f32 %v2157_v44, %v951_v51  ;;  %v56_v51 = vld [vmem:[#allocation2 + $0x70] sm:$0xff] }
 0x38f   :  { %v924_v15 = vpop.f32.mrf.mxu0 }
 0x390   :  { %v953_v7 = vpop.f32.mrf.mxu1  ;;  %v925_v21 = vadd.f32 %v924_v15, %v867_v50  ;;  %v1741_v15 = vld [vmem:[#allocation2 + $0x90] sm:$0xff]  ;;  %v857_v50 = vperm.slane %v1902_v34, 2 }
 0x391   :  { %v954_v58 = vadd.f32 %v953_v7, %v868_v30  ;;  %1070 = vperm.xlu0 %1606, %v1741_v15   ;;  %v858_v30 = vperm.slane %v1905_v35, 2  ;;  %v1814_v15 = vmov 4  }
 0x392   :  { %v1041_v54 = vadd.f32 %v2153_v9, %v925_v21  ;;  %v869_v3 = vmul.f32 %v857_v50, %v2155_v19  ;;  %v861_v33 = vmul.f32 %v857_v50, %v2162_v52  ;;  %1608 = vset.pattern.permute.xlu1 %v1814_v15  ;;  %v2276_v15 = vld [vmem:[%s2316_s0 + $0x10] sm:$0x7] }
 0x393   :  { %v1042_v53 = vadd.f32 %v2153_v9, %v954_v58  ;;  %v870_v21 = vmul.f32 %v858_v30, %v2155_v19  ;;  %v873_v58 = vmul.f32 %v857_v50, %v2147_v31  ;;  %v866_v34 = vmul.f32 %v858_v30, %v2149_v43 }
 0x394   :  { %v874_v32 = vmul.f32 %v858_v30, %v2147_v31  ;;  %v862_v19 = vmul.f32 %v858_v30, %v2162_v52 }
 0x397   :  { %v927_v37 = vpop.f32.mrf.mxu0 }
 0x398   :  { %v928_v38 = vadd.f32 %v927_v37, %v871_v36  ;;  %v956_v59 = vpop.f32.mrf.mxu1  ;;  %v865_v36 = vmul.f32 %v857_v50, %v2149_v43  ;;  %v1742_v37 = vld [vmem:[#allocation2 + $0x88] sm:$0xff] }
 0x399   :  { %v957_v60 = vadd.f32 %v956_v59, %v872_v56  ;;  %1066 = vperm.xlu0 %1606, %v1742_v37  }
 0x39a   :  { %v1045_v10 = vadd.f32 %v2151_v46, %v928_v38 }
 0x39b   :  { %v1046_v49 = vadd.f32 %v2151_v46, %v957_v60 }
 0x39c   :  { %1675 = vtanh.f32 %v1045_v10 }
 0x39d   :  { %1677 = vtanh.f32 %v1046_v49 }
 0x39e   :  { %1679 = vtanh.f32 %v1041_v54  ;;  %v976_v45 = vpop.f32.mrf.mxu2 }
 0x39f   :  { %1681 = vtanh.f32 %v1042_v53  ;;  %v1005_v11 = vpop.f32.mrf.mxu3  ;;  %v977_v54 = vadd.f32 %v976_v45, %v861_v33 }
 0x3a0   :  { %1683 = vtanh.f32 %v1037_v63  ;;  %v1006_v43 = vadd.f32 %v1005_v11, %v862_v19  ;;  %v2227_v11 = vpop.permute.xlu0 %1078 }
 0x3a1   :  { %1685 = vtanh.f32 %v1038_v24  ;;  %v1035_v63 = vadd.f32 %v2173_v6, %v977_v54 }
 0x3a2   :  { %v1676_v13 = vpop.eup %1675  ;;  %1687 = vtanh.f32 %v1033_v1  ;;  %v1036_v23 = vadd.f32 %v2173_v6, %v1006_v43 }
 0x3a3   :  { %v1678_v2 = vpop.eup %1677  ;;  %1689 = vtanh.f32 %v1034_v0  ;;  %1105 = vmatpush.msrb.mxu0 %v1676_v13 }
 0x3a4   :  { %v1680_v8 = vpop.eup %1679  ;;  %1134 = vmatpush.msrb.mxu1 %v1678_v2 }
 0x3a5   :  { %v1682_v22 = vpop.eup %1681  ;;  %1106 = vmatpush.msrb.mxu0 %v1680_v8 }
 0x3a6   :  { %v1684_v42 = vpop.eup %1683  ;;  %v979_v4 = vpop.f32.mrf.mxu2  ;;  %1135 = vmatpush.msrb.mxu1 %v1682_v22 }
 0x3a7   :  { %v1686_v27 = vpop.eup %1685  ;;  %v1008_v55 = vpop.f32.mrf.mxu3  ;;  %1107 = vmatpush.msrb.mxu0 %v1684_v42  ;;  %v980_v38 = vadd.f32 %v979_v4, %v865_v36 }
 0x3a8   :  { %v1688_v5 = vpop.eup %1687  ;;  %1136 = vmatpush.msrb.mxu1 %v1686_v27  ;;  %v1009_v60 = vadd.f32 %v1008_v55, %v866_v34  ;;  %v2229_v8 = vpop.permute.xlu0 %1074  ;;  %v1813_v55 = vmov 11  }
 0x3a9   :  { %v1690_v48 = vpop.eup %1689  ;;  %1108 = vmatpush.msrb.mxu0 %v1688_v5  ;;  %v1039_v49 = vadd.f32 %v2157_v44, %v980_v38  ;;  %1607 = vset.pattern.permute.xlu0 %v1813_v55  ;;  %v2264_v55 = vld [vmem:[%s2316_s0 + $0x10] sm:$0x18] }
 0x3aa   :  { %1137 = vmatpush.msrb.mxu1 %v1690_v48  ;;  %1552 = vmatmul.msk.f32.vlgmr.msrb.gmra.mxu0 %vm270_vm2, %v2181_v47  ;;  %v1040_v52 = vadd.f32 %v2157_v44, %v1009_v60 }
 0x3ab   :  { %1556 = vmatmul.msk.f32.vlgmr.msrb.gmra.mxu1 %vm270_vm2, %v2181_v47 }
 0x3ae   :  { %v982_v7 = vpop.f32.mrf.mxu2 }
 0x3af   :  { %v1011_v28 = vpop.f32.mrf.mxu3  ;;  %v983_v57 = vadd.f32 %v982_v7, %v869_v3 }
 0x3b0   :  { %v1012_v35 = vadd.f32 %v1011_v28, %v870_v21 }
 0x3b1   :  { %v1043_v10 = vadd.f32 %v2153_v9, %v983_v57 }
 0x3b2   :  { %1553 = vmatmul.msk.f32.gmra.mxu0 %vm270_vm2, %v2187_v29  ;;  %v1044_v53 = vadd.f32 %v2153_v9, %v1012_v35  ;;  %v57_v9 = vld [vmem:[#allocation2 + $0x78] sm:$0xff] }
 0x3b3   :  { %1557 = vmatmul.msk.f32.gmra.mxu1 %vm270_vm2, %v2187_v29 }
 0x3b6   :  { %v985_v56 = vpop.f32.mrf.mxu2 }
 0x3b7   :  { %v986_v59 = vadd.f32 %v985_v56, %v873_v58  ;;  %v1014_v39 = vpop.f32.mrf.mxu3 }
 0x3b8   :  { %v1015_v40 = vadd.f32 %v1014_v39, %v874_v32 }
 0x3b9   :  { %v1047_v61 = vadd.f32 %v2151_v46, %v986_v59 }
 0x3ba   :  { %v1048_v31 = vadd.f32 %v2151_v46, %v1015_v40  ;;  %1554 = vmatmul.msk.f32.gmra.mxu0 %vm270_vm2, %v56_v51  ;;  %v1815_v40 = vmov 5  }
 0x3bb   :  { %1691 = vtanh.f32 %v1047_v61  ;;  %1558 = vmatmul.msk.f32.gmra.mxu1 %vm270_vm2, %v56_v51  ;;  %1609 = vset.pattern.permute.xlu2 %v1815_v40 }
 0x3bc   :  { %1693 = vtanh.f32 %v1048_v31 }
 0x3bd   :  { %1695 = vtanh.f32 %v1043_v10 }
 0x3be   :  { %1697 = vtanh.f32 %v1044_v53 }
 0x3bf   :  { %1699 = vtanh.f32 %v1039_v49 }
 0x3c0   :  { %1701 = vtanh.f32 %v1040_v52 }
 0x3c1   :  { %v1692_v46 = vpop.eup %1691  ;;  %1703 = vtanh.f32 %v1035_v63 }
 0x3c2   :  { %v1694_v24 = vpop.eup %1693  ;;  %1705 = vtanh.f32 %v1036_v23  ;;  %1163 = vmatpush.msrb.mxu2 %v1692_v46  ;;  %1555 = vmatmul.msk.f32.gmra.mxu0 %vm270_vm2, %v57_v9 }
 0x3c3   :  { %v1696_v17 = vpop.eup %1695  ;;  %1192 = vmatpush.msrb.mxu3 %v1694_v24  ;;  %1559 = vmatmul.msk.f32.gmra.mxu1 %vm270_vm2, %v57_v9 }
 0x3c4   :  { %v1698_v44 = vpop.eup %1697  ;;  %1164 = vmatpush.msrb.mxu2 %v1696_v17 }
 0x3c5   :  { %v1700_v1 = vpop.eup %1699  ;;  %1193 = vmatpush.msrb.mxu3 %v1698_v44 }
 0x3c6   :  { %v1702_v6 = vpop.eup %1701  ;;  %1165 = vmatpush.msrb.mxu2 %v1700_v1 }
 0x3c7   :  { %v1704_v45 = vpop.eup %1703  ;;  %1194 = vmatpush.msrb.mxu3 %v1702_v6 }
 0x3c8   :  { %v1706_v0 = vpop.eup %1705  ;;  %1166 = vmatpush.msrb.mxu2 %v1704_v45 }
 0x3c9   :  { %1195 = vmatpush.msrb.mxu3 %v1706_v0  ;;  %1560 = vmatmul.msk.f32.vlgmr.msrb.gmra.mxu2 %vm270_vm2, %v2181_v47 }
 0x3ca   :  { %1564 = vmatmul.msk.f32.vlgmr.msrb.gmra.mxu3 %vm270_vm2, %v2181_v47  ;;  %v1743_v47 = vld [vmem:[#allocation2 + $0x88] sm:$0x3] }
 0x3cb   :  { %1226 = vperm.xlu0 %1607, %v1743_v47   ;;  %1313 = vperm.xlu1 %1608, %v1743_v47  }
 0x3cc   :  { %1321 = vperm.xlu2 %1609, %v1743_v47   ;;  %v2269_v47 = vld [vmem:[%s2316_s0 + $0x18] sm:$0x18] }
 0x3d1   :  { %1561 = vmatmul.msk.f32.gmra.mxu2 %vm270_vm2, %v2187_v29 }
 0x3d2   :  { %1565 = vmatmul.msk.f32.gmra.mxu3 %vm270_vm2, %v2187_v29 }
 0x3d3   :  { %1610 = vset.pattern.permute.xlu0 %v1815_v40 }
 0x3d9   :  { %1562 = vmatmul.msk.f32.gmra.mxu2 %vm270_vm2, %v56_v51 }
 0x3da   :  { %1566 = vmatmul.msk.f32.gmra.mxu3 %vm270_vm2, %v56_v51  ;;  %v58_v51 = vld [vmem:[#allocation2 + $0x80] sm:$0x3] }
 0x3e1   :  { %1563 = vmatmul.msk.f32.gmra.mxu2 %vm270_vm2, %v57_v9 }
 0x3e2   :  { %1567 = vmatmul.msk.f32.gmra.mxu3 %vm270_vm2, %v57_v9 }
 0x403   :  { %v2231_v42 = vpop.permute.xlu0 %1070 }
 0x40b   :  { %v1067_v28 = vpop.permute.xlu0 %1066 }
 0x427   :  { %v1110_v13 = vpop.f32.mrf.mxu0 }
 0x428   :  { %v1139_v2 = vpop.f32.mrf.mxu1  ;;  %v1111_v36 = vadd.f32 %v1110_v13, %v1067_v28  ;;  %v32_v13 = vld [vmem:[%s2316_s0] sm:$0x18] }
 0x429   :  { %v1140_v57 = vadd.f32 %v1139_v2, %v1067_v28  ;;  %v33_v2 = vld [vmem:[%s2316_s0 + $0x8] sm:$0x18] }
 0x42f   :  { %v1113_v22 = vpop.f32.mrf.mxu0 }
 0x430   :  { %v1142_v26 = vpop.f32.mrf.mxu1  ;;  %v1114_v29 = vadd.f32 %v1113_v22, %v2231_v42  ;;  %v1349_v22 = vrot.slane %v33_v2, 1 }
 0x431   :  { %v1143_v3 = vadd.f32 %v1142_v26, %v2231_v42  ;;  %v1744_v26 = vld [vmem:[%s2316_s0] sm:$0x7] }
 0x437   :  { %v1116_v4 = vpop.f32.mrf.mxu0 }
 0x438   :  { %v1145_v27 = vpop.f32.mrf.mxu1  ;;  %v1117_v5 = vadd.f32 %v1116_v4, %v2229_v8  ;;  %v1745_v4 = vld [vmem:[%s2316_s0 + $0x8] sm:$0x7] }
 0x439   :  { %v1146_v48 = vadd.f32 %v1145_v27, %v2229_v8  ;;  %v1357_v27 = vmul.f32 %v1745_v4, %v1349_v22 }
 0x43a   :  { %1707 = vtanh.f32 %v1117_v5  ;;  %v1350_v5 = vrot.slane %v2264_v55, 1 }
 0x43b   :  { %1709 = vtanh.f32 %v1146_v48  ;;  %1434 = vst [vmem:[#allocation1 + $0x9] sm:$0xff] %v1357_v27  ;;  %v1351_v48 = vrot.slane %v2269_v47, 1 }
 0x43f   :  { %v1119_v7 = vpop.f32.mrf.mxu0 }
 0x440   :  { %v1120_v50 = vadd.f32 %v1119_v7, %v2227_v11  ;;  %v1148_v30 = vpop.f32.mrf.mxu1  ;;  %v1708_v58 = vpop.eup %1707  ;;  %v1358_v7 = vmul.f32 %v2276_v15, %v1350_v5 }
 0x441   :  { %v1149_v21 = vadd.f32 %v1148_v30, %v2227_v11  ;;  %v1710_v37 = vpop.eup %1709 }
 0x442   :  { %1711 = vtanh.f32 %v1120_v50  ;;  %1435 = vst [vmem:[#allocation1 + $0x12] sm:$0xff] %v1358_v7  ;;  %v1227_v50 = vpop.permute.xlu0 %1226 }
 0x443   :  { %1713 = vtanh.f32 %v1149_v21 }
 0x444   :  { %1715 = vtanh.f32 %v1114_v29 }
 0x445   :  { %1717 = vtanh.f32 %v1143_v3  ;;  %v1314_v3 = vpop.permute.xlu1 %1313 }
 0x446   :  { %1719 = vtanh.f32 %v1111_v36 }
 0x447   :  { %1721 = vtanh.f32 %v1140_v57 }
 0x448   :  { %v1712_v34 = vpop.eup %1711 }
 0x449   :  { %v1714_v35 = vpop.eup %1713  ;;  %1244 = vmatpush.msra.mxu0 %v1712_v34 }
 0x44a   :  { %v1716_v56 = vpop.eup %1715  ;;  %1264 = vmatpush.msra.mxu1 %v1714_v35 }
 0x44b   :  { %v1718_v32 = vpop.eup %1717  ;;  %1245 = vmatpush.msra.mxu0 %v1708_v58  ;;  %v1322_v58 = vpop.permute.xlu2 %1321 }
 0x44c   :  { %v1720_v33 = vpop.eup %1719  ;;  %v1168_v38 = vpop.f32.mrf.mxu2  ;;  %1265 = vmatpush.msra.mxu1 %v1710_v37 }
 0x44d   :  { %v1722_v59 = vpop.eup %1721  ;;  %v1197_v39 = vpop.f32.mrf.mxu3  ;;  %1246 = vmatpush.msra.mxu0 %v1716_v56  ;;  %v1169_v9 = vadd.f32 %v1168_v38, %v1067_v28 }
 0x44e   :  { %1266 = vmatpush.msra.mxu1 %v1718_v32  ;;  %v1198_v46 = vadd.f32 %v1197_v39, %v1067_v28  ;;  %v2282_v28 = vld [vmem:[%s2316_s0 + $0x18] sm:$0x7]  ;;  %s1816_s0 = smov [#allocation5]  }
 0x44f   :  { %1247 = vmatpush.msra.mxu0 %v1720_v33  ;;  %v1359_v29 = vmul.f32 %v2282_v28, %v1351_v48  ;;  %s1464_s11 = sshll.u32 %s1816_s0, 4  ;;  %s1465_s11 = int_to_ptr.vmem [resolvable:$true] %s1464_s11 }
 0x450   :  { %1267 = vmatpush.msra.mxu1 %v1722_v59  ;;  %1568 = vmatmul.msk.f32.vlgmr.msra.gmra.mxu0 %vm270_vm2, %v58_v51 }
 0x451   :  { %1569 = vmatmul.msk.f32.vlgmr.msra.gmra.mxu1 %vm270_vm2, %v58_v51  ;;  %1436 = vst [vmem:[#allocation1 + $0x1b] sm:$0xff] %v1359_v29 }
 0x454   :  { %v1171_v19 = vpop.f32.mrf.mxu2 }
 0x455   :  { %v1200_v60 = vpop.f32.mrf.mxu3  ;;  %v1172_v63 = vadd.f32 %v1171_v19, %v2231_v42 }
 0x456   :  { %v1201_v23 = vadd.f32 %v1200_v60, %v2231_v42 }
 0x45c   :  { %v1174_v54 = vpop.f32.mrf.mxu2 }
 0x45d   :  { %v1203_v10 = vpop.f32.mrf.mxu3  ;;  %v1175_v43 = vadd.f32 %v1174_v54, %v2229_v8 }
 0x45e   :  { %v1204_v49 = vadd.f32 %v1203_v10, %v2229_v8  ;;  %v1348_v8 = vrot.slane %v32_v13, 1 }
 0x460   :  { %v1356_v42 = vmul.f32 %v1744_v26, %v1348_v8 }
 0x462   :  { %1433 = vst [vmem:[#allocation1] sm:$0xff] %v1356_v42 }
 0x464   :  { %v1177_v61 = vpop.f32.mrf.mxu2 }
 0x465   :  { %v1178_v53 = vadd.f32 %v1177_v61, %v2227_v11  ;;  %v1206_v31 = vpop.f32.mrf.mxu3 }
 0x466   :  { %v1207_v52 = vadd.f32 %v1206_v31, %v2227_v11 }
 0x467   :  { %1723 = vtanh.f32 %v1178_v53 }
 0x468   :  { %1725 = vtanh.f32 %v1207_v52  ;;  %v814_v52 = vmul.f32 %v1744_v26, %v1744_v26  ;;  %v1440_v26 = vlaneseq }
 0x469   :  { %1727 = vtanh.f32 %v1175_v43 }
 0x46a   :  { %1729 = vtanh.f32 %v1204_v49  ;;  %vm2292_vm6 = vcmp.lt.s32.totalorder %v1440_v26, 512 }
 0x46b   :  { %1731 = vtanh.f32 %v1172_v63 }
 0x46c   :  { %1733 = vtanh.f32 %v1201_v23  ;;  %v815_v23 = vmul.f32 %v1745_v4, %v1745_v4 }
 0x46d   :  { %v1724_v24 = vpop.eup %1723  ;;  %1735 = vtanh.f32 %v1169_v9 }
 0x46e   :  { %v1726_v17 = vpop.eup %1725  ;;  %1737 = vtanh.f32 %v1198_v46  ;;  %1284 = vmatpush.msra.mxu2 %v1724_v24 }
 0x46f   :  { %v1728_v44 = vpop.eup %1727  ;;  %1304 = vmatpush.msra.mxu3 %v1726_v17 }
 0x470   :  { %v1730_v1 = vpop.eup %1729  ;;  %1285 = vmatpush.msra.mxu2 %v1728_v44 }
 0x471   :  { %v1732_v6 = vpop.eup %1731  ;;  %1305 = vmatpush.msra.mxu3 %v1730_v1 }
 0x472   :  { %v1734_v45 = vpop.eup %1733  ;;  %1286 = vmatpush.msra.mxu2 %v1732_v6 }
 0x473   :  { %v1736_v0 = vpop.eup %1735  ;;  %1306 = vmatpush.msra.mxu3 %v1734_v45 }
 0x474   :  { %v1738_v11 = vpop.eup %1737  ;;  %1287 = vmatpush.msra.mxu2 %v1736_v0 }
 0x475   :  { %1307 = vmatpush.msra.mxu3 %v1738_v11  ;;  %1570 = vmatmul.msk.f32.vlgmr.msra.gmra.mxu2 %vm270_vm2, %v58_v51 }
 0x476   :  { %1571 = vmatmul.msk.f32.vlgmr.msra.gmra.mxu3 %vm270_vm2, %v58_v51 }
 0x4cd   :  { %v1249_v30 = vpop.f32.mrf.mxu0 }
 0x4ce   :  { %v1250_v21 = vadd.f32 %v1249_v30, %v1227_v50  ;;  %v1269_v36 = vpop.f32.mrf.mxu1  ;;  %v816_v30 = vmul.f32 %v2276_v15, %v2276_v15 }
 0x4cf   :  { %v1270_v57 = vadd.f32 %v1269_v36, %v1227_v50  ;;  %v817_v36 = vmul.f32 %v2282_v28, %v2282_v28 }
 0x4d0   :  { %v1316_v37 = vmul.f32 %v1314_v3, %v1250_v21 }
 0x4d1   :  { %v1317_v34 = vmul.f32 %v1314_v3, %v1270_v57 }
 0x4d2   :  { %v1324_v35 = vadd.f32 %v1322_v58, %v1316_v37 }
 0x4d3   :  { %v1325_v56 = vadd.f32 %v1322_v58, %v1317_v34 }
 0x4d4   :  { %v1332_v32 = vrot.slane %v1324_v35, 5 }
 0x4d5   :  { %v1333_v33 = vrot.slane %v1325_v56, 5  ;;  %v1420_v38 = vrot.slane %v1325_v56, 4 }
 0x4d6   :  { %v1340_v59 = vsub.f32 %v32_v13, %v1332_v32 }
 0x4d7   :  { %v1341_v39 = vsub.f32 %v33_v2, %v1333_v33  ;;  %v1423_v51 = vsel %vm1422_vm5, %v1324_v35, %v1420_v38  ;;  %v1438_v2 = vld [vmem:[#allocation1 + $0x2] ss:$9 sm:$0xff] }
 0x4d8   :  { %v1364_v19 = vrot.slane %v1340_v59, 3  ;;  %1427 = vst [vmem:[#allocation5] sm:$0x33] %v1423_v51  ;;  %v1404_v24 = vrot.slane %v1340_v59, 1 }
 0x4d9   :  { %v1365_v60 = vrot.slane %v1341_v39, 3  ;;  %v1405_v44 = vrot.slane %v1341_v39, 1  ;;  %1445 = vst.msk [vmem:[#allocation5 + $0x2] ss:$4 sm:$0xf] %vm2292_vm6, %v1438_v2 }
 0x4da   :  { %v1372_v40 = vmul.f32 %v1364_v19, %v2104_v20  ;;  %v818_v20 = vmul.f32 %v814_v52, %v2098_v62 }
 0x4db   :  { %v1373_v54 = vmul.f32 %v1365_v60, %v2107_v14  ;;  %v819_v14 = vmul.f32 %v815_v23, %v2101_v12 }
 0x4dc   :  { %v1376_v10 = vsel %vm888_vm3, %v1372_v40, 0.0  ;;  %v1412_v0 = vmul.f32 %v1404_v24, %v818_v20 }
 0x4dd   :  { %v1377_v61 = vrot.slane %v1376_v10, 4  ;;  %v1383_v43 = vsel %vm888_vm3, %v1373_v54, 0.0  ;;  %v1413_v13 = vmul.f32 %v1405_v44, %v819_v14 }
 0x4de   :  { %v1384_v53 = vrot.slane %v1383_v43, 4 }
 0x4df   :  { %v1378_v31 = vadd.f32 %v1377_v61, %v1376_v10 }
 0x4e0   :  { %v1385_v49 = vadd.f32 %v1384_v53, %v1383_v43 }
 0x4e1   :  { %v1379_v63 = vrot.slane %v1378_v31, 2 }
 0x4e2   :  { %v1386_v9 = vrot.slane %v1385_v49, 2 }
 0x4e3   :  { %v1380_v46 = vadd.f32 %v1379_v63, %v1378_v31 }
 0x4e4   :  { %v1387_v17 = vadd.f32 %v1386_v9, %v1385_v49 }
 0x4e5   :  { %v1381_v1 = vrot.slane %v1380_v46, 1 }
 0x4e6   :  { %v1388_v6 = vrot.slane %v1387_v17, 1 }
 0x4e7   :  { %v1382_v45 = vadd.f32 %v1381_v1, %v1380_v46 }
 0x4e8   :  { %v1389_v11 = vadd.f32 %v1388_v6, %v1387_v17 }
 0x4e9   :  { %v1416_v8 = vadd.f32 %v1412_v0, %v1382_v45 }
 0x4ea   :  { %v1417_v22 = vadd.f32 %v1413_v13, %v1389_v11 }
 0x4eb   :  { %1450 = vst [vmem:[#allocation1] sm:$0xff] %v1416_v8 }
 0x4ec   :  { %1451 = vst [vmem:[#allocation1 + $0x9] sm:$0xff] %v1417_v22 }
 0x4f8   :  { %v1289_v4 = vpop.f32.mrf.mxu2 }
 0x4f9   :  { %v1290_v62 = vadd.f32 %v1289_v4, %v1227_v50  ;;  %v1309_v12 = vpop.f32.mrf.mxu3 }
 0x4fa   :  { %v1310_v27 = vadd.f32 %v1309_v12, %v1227_v50  ;;  %v820_v50 = vmul.f32 %v816_v30, %v2120_v16 }
 0x4fb   :  { %v1318_v5 = vmul.f32 %v1314_v3, %v1290_v62 }
 0x4fc   :  { %v1319_v48 = vmul.f32 %v1314_v3, %v1310_v27 }
 0x4fd   :  { %v1326_v7 = vadd.f32 %v1322_v58, %v1318_v5 }
 0x4fe   :  { %v1327_v29 = vadd.f32 %v1322_v58, %v1319_v48  ;;  %v821_v58 = vmul.f32 %v817_v36, %v2123_v18 }
 0x4ff   :  { %v1334_v21 = vrot.slane %v1326_v7, 5 }
 0x500   :  { %v1335_v57 = vrot.slane %v1327_v29, 5  ;;  %v1421_v37 = vrot.slane %v1327_v29, 4 }
 0x501   :  { %v1342_v34 = vsub.f32 %v2264_v55, %v1334_v21 }
 0x502   :  { %v1343_v35 = vsub.f32 %v2269_v47, %v1335_v57  ;;  %v1424_v56 = vsel %vm1422_vm5, %v1326_v7, %v1421_v37 }
 0x503   :  { %v1366_v3 = vrot.slane %v1342_v34, 3  ;;  %v1406_v32 = vrot.slane %v1342_v34, 1  ;;  %1428 = vst [vmem:[#allocation5 + $0x8] sm:$0x33] %v1424_v56 }
 0x504   :  { %v1367_v15 = vrot.slane %v1343_v35, 3  ;;  %v1407_v33 = vrot.slane %v1343_v35, 1 }
 0x505   :  { %v1374_v38 = vmul.f32 %v1366_v3, %v2127_v41  ;;  %v1414_v28 = vmul.f32 %v1406_v32, %v820_v50 }
 0x506   :  { %v1375_v59 = vmul.f32 %v1367_v15, %v2131_v25  ;;  %v1415_v39 = vmul.f32 %v1407_v33, %v821_v58 }
 0x507   :  { %v1390_v55 = vsel %vm888_vm3, %v1374_v38, 0.0 }
 0x508   :  { %v1391_v47 = vrot.slane %v1390_v55, 4  ;;  %v1397_v51 = vsel %vm888_vm3, %v1375_v59, 0.0 }
 0x509   :  { %v1398_v19 = vrot.slane %v1397_v51, 4 }
 0x50a   :  { %v1392_v16 = vadd.f32 %v1391_v47, %v1390_v55 }
 0x50b   :  { %v1399_v60 = vadd.f32 %v1398_v19, %v1397_v51 }
 0x50c   :  { %v1393_v40 = vrot.slane %v1392_v16, 2 }
 0x50d   :  { %v1400_v54 = vrot.slane %v1399_v60, 2 }
 0x50e   :  { %v1394_v10 = vadd.f32 %v1393_v40, %v1392_v16 }
 0x50f   :  { %v1401_v18 = vadd.f32 %v1400_v54, %v1399_v60 }
 0x510   :  { %v1395_v61 = vrot.slane %v1394_v10, 1 }
 0x511   :  { %v1402_v43 = vrot.slane %v1401_v18, 1 }
 0x512   :  { %v1396_v53 = vadd.f32 %v1395_v61, %v1394_v10 }
 0x513   :  { %v1403_v41 = vadd.f32 %v1402_v43, %v1401_v18 }
 0x514   :  { %v1418_v31 = vadd.f32 %v1414_v28, %v1396_v53 }
 0x515   :  { %v1419_v49 = vadd.f32 %v1415_v39, %v1403_v41 }
 0x516   :  { %1452 = vst [vmem:[#allocation1 + $0x12] sm:$0xff] %v1418_v31 }
 0x517   :  { %1453 = vst [vmem:[#allocation1 + $0x1b] sm:$0xff] %v1419_v49 }
 0x51e   :  { %v1455_v25 = vld [vmem:[#allocation1 + $0x2] ss:$9 sm:$0xff] }
 0x51f   :  { %1458 = vst.msk [vmem:[#allocation5 + $0x3] ss:$4 sm:$0xf] %vm2292_vm6, %v1455_v25 }
 0x520   :  { %1469 = dma.vmem_to_hbm [thread:$0]  %s1465_s11, 256, %s1467_s14, [#allocation4]  }
 0x521   :  { %1798 = dma.done.wait [#allocation4], 256  }
 0x522   :  { %1799 = vsyncadd [#allocation4], 4294967040 }
 0x523   :  { %1474 = vsyncpa [#allocation3], 1 }
 0x524   :  { %1475 = vsyncpa [#allocation4], 1 }

</bundles_post_ra>
